<compile_context>
chip_gen: v7x
topology: tpu7x:2x2x1
jax: 0.10.0
libtpu: 0.0.40
codegen_flags: <defaults>
</compile_context>

<pallas_src>
import functools

import jax
import jax.numpy as jnp
import numpy as np
from jax.experimental import pallas as pl
from jax.experimental.pallas import tpu as pltpu


def rcnn_kernel(x_ref, w_ref, o_ref, h_scr, *, seq, batch_pad, hidden, ksize):
    """Whole forward in one kernel (tiny shapes, everything VMEM-resident).

    x_ref : (S*BP, CA)   augmented input; row s*BP+b == [x[s,b,:], 1, 0...] for
                         real rows, exactly zero for batch-pad rows
    w_ref : (CA, 2H+K*2H) packed params:
              [:,  0:H ]  rows 0:H = W_ih^T, row H = b_ih+b_hh, rest 0
              [0:H, H:2H] W_hh^T
              [0:H, 2H: ] per-tap [conv | gate] weights, (H, K*2H)
    o_ref : (S*BP, H)    output (flat, padded batch)
    h_scr : (S*BP, H)    VMEM scratch holding every h_t at aligned offsets
    """
    S, BP, H, K = seq, batch_pad, hidden, ksize
    SB = S * BP
    pad = (K - 1) // 2
    two_h = 2 * H
    hp = jax.lax.Precision.HIGHEST

    wih_aug = w_ref[:, 0:H]                               # (CA, H), bias folded in
    whh_t = w_ref[0:H, H:two_h]                           # (H, H)
    w_taps = w_ref[0:H, two_h:two_h + K * two_h]          # (H, K*2H)

    # ---- Hoisted input projection (bias via ones-column; pad rows stay 0) ---
    xproj = jnp.dot(x_ref[...], wih_aug,
                    preferred_element_type=jnp.float32, precision=hp)  # (SB,H)

    # ---- Serial RNN recurrence, fully unrolled, 8-aligned scratch writes ----
    h = jnp.tanh(xproj[0:BP, :])                          # h_{-1} = 0
    h_scr[0:BP, :] = h
    for t in range(1, S):
        h = jnp.tanh(xproj[t * BP:(t + 1) * BP, :]
                     + jnp.dot(h, whh_t, preferred_element_type=jnp.float32,
                               precision=hp))
        h_scr[t * BP:(t + 1) * BP, :] = h

    # ---- Gated CNN over the batch axis: one matmul, shift-after-matmul ------
    # p[i, dk*2H:(dk+1)*2H] = h[i] @ [conv_dk | gate_dk].  The batch-pad rows
    # of h are exactly zero, so the rotated slabs need no boundary masks:
    # every out-of-range / wrapped source row is a zero row.
    p = jnp.dot(h_scr[...], w_taps,
                preferred_element_type=jnp.float32, precision=hp)  # (SB, K*2H)
    acc = p[:, pad * two_h:(pad + 1) * two_h]             # center tap, d = 0
    for dk in range(K):
        d = dk - pad
        if d == 0:
            continue
        slab = p[:, dk * two_h:(dk + 1) * two_h]
        # want shifted[i] = p[i + d]  ==  jnp.roll(p, -d)[i]
        acc = acc + pltpu.roll(slab, shift=(-d) % SB, axis=0)

    a = acc[:, :H]
    g = acc[:, H:]
    o_ref[...] = (a * jax.nn.sigmoid(g)).astype(o_ref.dtype)   # one full store


@jax.jit
def rcnn_forward(x, w_ih, w_hh, b_ih, b_hh, w_conv, w_gate):
    S, B, H = x.shape
    K = w_conv.shape[-1]
    pad = (K - 1) // 2
    two_h = 2 * H
    # Pad batch to a sublane multiple with >= `pad` all-zero rows per group so
    # per-timestep slices are 8-aligned and the conv shifts need no masks.
    BP = -(-(B + pad) // 8) * 8
    CA = -(-(H + 1) // 8) * 8        # augmented contraction dim (x | 1 | 0...)

    # Augmented input: real rows carry [x, 1, 0...]; pad rows are exactly zero.
    x_aug = jnp.zeros((S, BP, CA), x.dtype)
    x_aug = x_aug.at[:, :B, :H].set(x)
    x_aug = x_aug.at[:, :B, H].set(1.0)
    x_aug = x_aug.reshape(S * BP, CA)

    # All parameters packed into ONE aligned array -> a single prologue DMA.
    w_big = jnp.concatenate(
        [jnp.concatenate([w_conv[:, :, dk].T, w_gate[:, :, dk].T], axis=1)
         for dk in range(K)], axis=1)                      # (H, K*2H)
    w_all = jnp.zeros((CA, two_h + K * two_h), jnp.float32)
    w_all = w_all.at[:H, :H].set(w_ih.T)
    w_all = w_all.at[H, :H].set(b_ih + b_hh)
    w_all = w_all.at[:H, H:two_h].set(w_hh.T)
    w_all = w_all.at[:H, two_h:two_h + K * two_h].set(w_big)

    vmem = pl.BlockSpec(memory_space=pltpu.MemorySpace.VMEM)
    out_flat = pl.pallas_call(
        functools.partial(rcnn_kernel, seq=S, batch_pad=BP, hidden=H, ksize=K),
        out_shape=jax.ShapeDtypeStruct((S * BP, H), x.dtype),
        in_specs=[vmem, vmem],
        out_specs=vmem,
        scratch_shapes=[pltpu.VMEM((S * BP, H), jnp.float32)],
    )(x_aug, w_all)
    return out_flat.reshape(S, BP, H)[:, :B, :]


def rcnn_reference(x, w_ih, w_hh, b_ih, b_hh, w_conv, w_gate):
    """Pure-JAX reference replicating the PyTorch module semantics."""
    S, B, H = x.shape
    K = w_conv.shape[-1]
    pad = (K - 1) // 2
    hp = jax.lax.Precision.HIGHEST

    def step(h, xt):
        h_new = jnp.tanh(jnp.dot(xt, w_ih.T, precision=hp) + b_ih
                         + jnp.dot(h, w_hh.T, precision=hp) + b_hh)
        return h_new, h_new

    h0 = jnp.zeros((B, H), x.dtype)
    _, ys = jax.lax.scan(step, h0, x)                       # (S, B, H)

    yp = jnp.pad(ys, ((0, 0), (pad, pad), (0, 0)))          # Conv1d zero pad

    def conv(w):
        out = jnp.zeros((S, B, H), jnp.float32)
        for dk in range(K):
            out = out + jnp.einsum('sbc,oc->sbo', yp[:, dk:dk + B, :],
                                   w[:, :, dk], precision=hp)
        return out

    a = conv(w_conv)
    g = conv(w_gate)
    return a * jax.nn.sigmoid(g)


if __name__ == "__main__":
    S, B, H, K = 8, 4, 32, 3   # seq, batch, hidden_size, kernel_size

    key = jax.random.PRNGKey(0)
    keys = jax.random.split(key, 7)
    x = jax.random.normal(keys[0], (S, B, H), jnp.float32)

    # Deterministic synthetic parameters (shapes match nn.RNN / nn.Conv1d).
    w_ih = 0.1 * jax.random.normal(keys[1], (H, H), jnp.float32)       # RNN weight_ih_l0
    w_hh = 0.1 * jax.random.normal(keys[2], (H, H), jnp.float32)       # RNN weight_hh_l0
    b_ih = 0.1 * jax.random.normal(keys[3], (H,), jnp.float32)         # RNN bias_ih_l0
    b_hh = 0.1 * jax.random.normal(keys[4], (H,), jnp.float32)         # RNN bias_hh_l0
    w_conv = 0.1 * jax.random.normal(keys[5], (H, H, K), jnp.float32)  # Conv1d (value), no bias
    w_gate = 0.1 * jax.random.normal(keys[6], (H, H, K), jnp.float32)  # Conv1d (gate),  no bias

    out = rcnn_forward(x, w_ih, w_hh, b_ih, b_hh, w_conv, w_gate)
    out = jax.block_until_ready(out)

    ref = jax.block_until_ready(
        rcnn_reference(x, w_ih, w_hh, b_ih, b_hh, w_conv, w_gate))
    np.testing.assert_allclose(np.asarray(out), np.asarray(ref),
                               rtol=1e-4, atol=1e-4)

    print("KERNEL_OK")
</pallas_src>

<mosaic_0001>
module attributes {stable_mosaic.version = 11 : i64} {
  func.func @rcnn_kernel(%arg0: memref<64x40xf32, #tpu.memory_space<vmem>>, %arg1: memref<40x256xf32, #tpu.memory_space<vmem>>, %arg2: memref<64x32xf32, #tpu.memory_space<vmem>>, %arg3: memref<64x32xf32, #tpu.memory_space<vmem>>) attributes {dimension_semantics = [], scalar_prefetch = 0 : i64, scratch_operands = 1 : i64, tpu.core_type = #tpu.core_type<tc>} {
    %c0 = arith.constant 0 : index
    %c0_0 = arith.constant 0 : index
    %0 = vector.load %arg1[%c0, %c0_0] : memref<40x256xf32, #tpu.memory_space<vmem>>, vector<40x32xf32>
    %c0_1 = arith.constant 0 : index
    %c32 = arith.constant 32 : index
    %1 = vector.load %arg1[%c0_1, %c32] : memref<40x256xf32, #tpu.memory_space<vmem>>, vector<32x32xf32>
    %c0_2 = arith.constant 0 : index
    %c64 = arith.constant 64 : index
    %2 = vector.load %arg1[%c0_2, %c64] : memref<40x256xf32, #tpu.memory_space<vmem>>, vector<32x192xf32>
    %c0_3 = arith.constant 0 : index
    %c0_4 = arith.constant 0 : index
    %3 = vector.load %arg0[%c0_3, %c0_4] : memref<64x40xf32, #tpu.memory_space<vmem>>, vector<64x40xf32>
    %cst = arith.constant dense<0.000000e+00> : vector<64x32xf32>
    %4 = tpu.matmul %3, %0, %cst {dimension_numbers = #tpu.dot_dimension_numbers<[1], [0], [0], [1], [0, 0, 1, 1], [], []>, precision = #tpu.contract_precision<fp32>} : vector<64x40xf32>, vector<40x32xf32>, vector<64x32xf32> -> vector<64x32xf32>
    %5 = vector.extract_strided_slice %4 {offsets = [0, 0], sizes = [8, 32], strides = [1, 1]} : vector<64x32xf32> to vector<8x32xf32>
    %6 = math.tanh %5 : vector<8x32xf32>
    %c0_5 = arith.constant 0 : index
    %c0_6 = arith.constant 0 : index
    %7 = vector.load %arg3[%c0_5, %c0_6] : memref<64x32xf32, #tpu.memory_space<vmem>>, vector<8x32xf32>
    tpu.vector_store %arg3[%c0_5, %c0_6], %6 {strides = array<i32>} : memref<64x32xf32, #tpu.memory_space<vmem>>, vector<8x32xf32>,
    %8 = vector.extract_strided_slice %4 {offsets = [8, 0], sizes = [8, 32], strides = [1, 1]} : vector<64x32xf32> to vector<8x32xf32>
    %cst_7 = arith.constant dense<0.000000e+00> : vector<8x32xf32>
    %9 = tpu.matmul %6, %1, %cst_7 {dimension_numbers = #tpu.dot_dimension_numbers<[1], [0], [0], [1], [0, 0, 1, 1], [], []>, precision = #tpu.contract_precision<fp32>} : vector<8x32xf32>, vector<32x32xf32>, vector<8x32xf32> -> vector<8x32xf32>
    %10 = arith.addf %8, %9 : vector<8x32xf32>
    %11 = math.tanh %10 : vector<8x32xf32>
    %c8 = arith.constant 8 : index
    %c0_8 = arith.constant 0 : index
    %12 = vector.load %arg3[%c8, %c0_8] : memref<64x32xf32, #tpu.memory_space<vmem>>, vector<8x32xf32>
    tpu.vector_store %arg3[%c8, %c0_8], %11 {strides = array<i32>} : memref<64x32xf32, #tpu.memory_space<vmem>>, vector<8x32xf32>,
    %13 = vector.extract_strided_slice %4 {offsets = [16, 0], sizes = [8, 32], strides = [1, 1]} : vector<64x32xf32> to vector<8x32xf32>
    %cst_9 = arith.constant dense<0.000000e+00> : vector<8x32xf32>
    %14 = tpu.matmul %11, %1, %cst_9 {dimension_numbers = #tpu.dot_dimension_numbers<[1], [0], [0], [1], [0, 0, 1, 1], [], []>, precision = #tpu.contract_precision<fp32>} : vector<8x32xf32>, vector<32x32xf32>, vector<8x32xf32> -> vector<8x32xf32>
    %15 = arith.addf %13, %14 : vector<8x32xf32>
    %16 = math.tanh %15 : vector<8x32xf32>
    %c16 = arith.constant 16 : index
    %c0_10 = arith.constant 0 : index
    %17 = vector.load %arg3[%c16, %c0_10] : memref<64x32xf32, #tpu.memory_space<vmem>>, vector<8x32xf32>
    tpu.vector_store %arg3[%c16, %c0_10], %16 {strides = array<i32>} : memref<64x32xf32, #tpu.memory_space<vmem>>, vector<8x32xf32>,
    %18 = vector.extract_strided_slice %4 {offsets = [24, 0], sizes = [8, 32], strides = [1, 1]} : vector<64x32xf32> to vector<8x32xf32>
    %cst_11 = arith.constant dense<0.000000e+00> : vector<8x32xf32>
    %19 = tpu.matmul %16, %1, %cst_11 {dimension_numbers = #tpu.dot_dimension_numbers<[1], [0], [0], [1], [0, 0, 1, 1], [], []>, precision = #tpu.contract_precision<fp32>} : vector<8x32xf32>, vector<32x32xf32>, vector<8x32xf32> -> vector<8x32xf32>
    %20 = arith.addf %18, %19 : vector<8x32xf32>
    %21 = math.tanh %20 : vector<8x32xf32>
    %c24 = arith.constant 24 : index
    %c0_12 = arith.constant 0 : index
    %22 = vector.load %arg3[%c24, %c0_12] : memref<64x32xf32, #tpu.memory_space<vmem>>, vector<8x32xf32>
    tpu.vector_store %arg3[%c24, %c0_12], %21 {strides = array<i32>} : memref<64x32xf32, #tpu.memory_space<vmem>>, vector<8x32xf32>,
    %23 = vector.extract_strided_slice %4 {offsets = [32, 0], sizes = [8, 32], strides = [1, 1]} : vector<64x32xf32> to vector<8x32xf32>
    %cst_13 = arith.constant dense<0.000000e+00> : vector<8x32xf32>
    %24 = tpu.matmul %21, %1, %cst_13 {dimension_numbers = #tpu.dot_dimension_numbers<[1], [0], [0], [1], [0, 0, 1, 1], [], []>, precision = #tpu.contract_precision<fp32>} : vector<8x32xf32>, vector<32x32xf32>, vector<8x32xf32> -> vector<8x32xf32>
    %25 = arith.addf %23, %24 : vector<8x32xf32>
    %26 = math.tanh %25 : vector<8x32xf32>
    %c32_14 = arith.constant 32 : index
    %c0_15 = arith.constant 0 : index
    %27 = vector.load %arg3[%c32_14, %c0_15] : memref<64x32xf32, #tpu.memory_space<vmem>>, vector<8x32xf32>
    tpu.vector_store %arg3[%c32_14, %c0_15], %26 {strides = array<i32>} : memref<64x32xf32, #tpu.memory_space<vmem>>, vector<8x32xf32>,
    %28 = vector.extract_strided_slice %4 {offsets = [40, 0], sizes = [8, 32], strides = [1, 1]} : vector<64x32xf32> to vector<8x32xf32>
    %cst_16 = arith.constant dense<0.000000e+00> : vector<8x32xf32>
    %29 = tpu.matmul %26, %1, %cst_16 {dimension_numbers = #tpu.dot_dimension_numbers<[1], [0], [0], [1], [0, 0, 1, 1], [], []>, precision = #tpu.contract_precision<fp32>} : vector<8x32xf32>, vector<32x32xf32>, vector<8x32xf32> -> vector<8x32xf32>
    %30 = arith.addf %28, %29 : vector<8x32xf32>
    %31 = math.tanh %30 : vector<8x32xf32>
    %c40 = arith.constant 40 : index
    %c0_17 = arith.constant 0 : index
    %32 = vector.load %arg3[%c40, %c0_17] : memref<64x32xf32, #tpu.memory_space<vmem>>, vector<8x32xf32>
    tpu.vector_store %arg3[%c40, %c0_17], %31 {strides = array<i32>} : memref<64x32xf32, #tpu.memory_space<vmem>>, vector<8x32xf32>,
    %33 = vector.extract_strided_slice %4 {offsets = [48, 0], sizes = [8, 32], strides = [1, 1]} : vector<64x32xf32> to vector<8x32xf32>
    %cst_18 = arith.constant dense<0.000000e+00> : vector<8x32xf32>
    %34 = tpu.matmul %31, %1, %cst_18 {dimension_numbers = #tpu.dot_dimension_numbers<[1], [0], [0], [1], [0, 0, 1, 1], [], []>, precision = #tpu.contract_precision<fp32>} : vector<8x32xf32>, vector<32x32xf32>, vector<8x32xf32> -> vector<8x32xf32>
    %35 = arith.addf %33, %34 : vector<8x32xf32>
    %36 = math.tanh %35 : vector<8x32xf32>
    %c48 = arith.constant 48 : index
    %c0_19 = arith.constant 0 : index
    %37 = vector.load %arg3[%c48, %c0_19] : memref<64x32xf32, #tpu.memory_space<vmem>>, vector<8x32xf32>
    tpu.vector_store %arg3[%c48, %c0_19], %36 {strides = array<i32>} : memref<64x32xf32, #tpu.memory_space<vmem>>, vector<8x32xf32>,
    %38 = vector.extract_strided_slice %4 {offsets = [56, 0], sizes = [8, 32], strides = [1, 1]} : vector<64x32xf32> to vector<8x32xf32>
    %cst_20 = arith.constant dense<0.000000e+00> : vector<8x32xf32>
    %39 = tpu.matmul %36, %1, %cst_20 {dimension_numbers = #tpu.dot_dimension_numbers<[1], [0], [0], [1], [0, 0, 1, 1], [], []>, precision = #tpu.contract_precision<fp32>} : vector<8x32xf32>, vector<32x32xf32>, vector<8x32xf32> -> vector<8x32xf32>
    %40 = arith.addf %38, %39 : vector<8x32xf32>
    %41 = math.tanh %40 : vector<8x32xf32>
    %c56 = arith.constant 56 : index
    %c0_21 = arith.constant 0 : index
    %42 = vector.load %arg3[%c56, %c0_21] : memref<64x32xf32, #tpu.memory_space<vmem>>, vector<8x32xf32>
    tpu.vector_store %arg3[%c56, %c0_21], %41 {strides = array<i32>} : memref<64x32xf32, #tpu.memory_space<vmem>>, vector<8x32xf32>,
    %c0_22 = arith.constant 0 : index
    %c0_23 = arith.constant 0 : index
    %43 = vector.load %arg3[%c0_22, %c0_23] : memref<64x32xf32, #tpu.memory_space<vmem>>, vector<64x32xf32>
    %cst_24 = arith.constant dense<0.000000e+00> : vector<64x192xf32>
    %44 = tpu.matmul %43, %2, %cst_24 {dimension_numbers = #tpu.dot_dimension_numbers<[1], [0], [0], [1], [0, 0, 1, 1], [], []>, precision = #tpu.contract_precision<fp32>} : vector<64x32xf32>, vector<32x192xf32>, vector<64x192xf32> -> vector<64x192xf32>
    %45 = vector.extract_strided_slice %44 {offsets = [0, 64], sizes = [64, 64], strides = [1, 1]} : vector<64x192xf32> to vector<64x64xf32>
    %46 = vector.extract_strided_slice %44 {offsets = [0, 0], sizes = [64, 64], strides = [1, 1]} : vector<64x192xf32> to vector<64x64xf32>
    %c1_i32 = arith.constant 1 : i32
    %47 = tpu.dynamic_rotate %46 by %c1_i32 dim 0 : vector<64x64xf32>, i32 -> vector<64x64xf32>
    %48 = arith.addf %45, %47 : vector<64x64xf32>
    %49 = vector.extract_strided_slice %44 {offsets = [0, 128], sizes = [64, 64], strides = [1, 1]} : vector<64x192xf32> to vector<64x64xf32>
    %c63_i32 = arith.constant 63 : i32
    %50 = tpu.dynamic_rotate %49 by %c63_i32 dim 0 : vector<64x64xf32>, i32 -> vector<64x64xf32>
    %51 = arith.addf %48, %50 : vector<64x64xf32>
    %52 = vector.extract_strided_slice %51 {offsets = [0, 0], sizes = [64, 32], strides = [1, 1]} : vector<64x64xf32> to vector<64x32xf32>
    %53 = vector.extract_strided_slice %51 {offsets = [0, 32], sizes = [64, 32], strides = [1, 1]} : vector<64x64xf32> to vector<64x32xf32>
    %54 = arith.negf %53 : vector<64x32xf32>
    %55 = math.exp %54 : vector<64x32xf32>
    %cst_25 = arith.constant 1.000000e+00 : f32
    %56 = vector.broadcast %cst_25 : f32 to vector<64x32xf32>
    %57 = arith.addf %56, %55 : vector<64x32xf32>
    %58 = arith.divf %56, %57 : vector<64x32xf32>
    %59 = arith.mulf %52, %58 : vector<64x32xf32>
    %c0_26 = arith.constant 0 : index
    %c0_27 = arith.constant 0 : index
    %60 = vector.load %arg2[%c0_26, %c0_27] : memref<64x32xf32, #tpu.memory_space<vmem>>, vector<64x32xf32>
    tpu.vector_store %arg2[%c0_26, %c0_27], %59 {strides = array<i32>} : memref<64x32xf32, #tpu.memory_space<vmem>>, vector<64x32xf32>,
    return
  }
}

</mosaic_0001>

<bundles_post_ra>
// kernel: rcnn_forward.1
= control target key start
LH: loop header
LB: loop body
LE: loop exit
PB: predicated region body
PF: predicated region fallthrough
CT: control target
= control target key end

     0   :  { %vm28_vm0 = vcmask 326656   ;;  %s6994_s21 = smov 96   ;;  %vm6996_vm1 = vmmov 0   ;;  %vm853_vm2 = vcmask 261120   ;;  %s6998_s9 = smov 64   ;;  %vm4336_vm3 = vcmask 523264   ;;  %s8034_s1 = inlined_call_operand.vmem [shape: f32[40,256], index: 1, kind: input, shape index: {}]   ;;  %s8035_s0 = inlined_call_operand.vmem [shape: f32[64,40], index: 0, kind: input, shape index: {}]   ;;  %s8036_s2 = inlined_call_operand.vmem [shape: f32[64,32], index: 2, kind: output, shape index: {}]  }
   0x1   :  { %v7017_v0 = vld [vmem:[%s8034_s1] sm:$0xff]  ;;  %v7022_v1 = vld [vmem:[%s8034_s1 + $0x10] sm:$0xff]  ;;  %v21_v12 = vld [vmem:[%s8035_s0 + $0x8] sm:$0xff] }
   0x2   :  { %v7027_v2 = vld [vmem:[%s8034_s1 + $0x20] sm:$0xff]  ;;  %v54_v3 = vand.u32 4294901760, %v7017_v0  ;;  %v57_v4 = vand.u32 4294901760, %v7022_v1  ;;  %v7034_v5 = vld [vmem:[%s8034_s1 + $0x30] sm:$0xff]  ;;  %859 = vrot.lane.b32.xlu0 %v7017_v0, %s6994_s21  ;;  %v23_v14 = vld [vmem:[%s8035_s0 + $0x18] sm:$0xff]  ;;  %v33_v17 = vsel %vm28_vm0, %v21_v12, 0 }
   0x3   :  { %v60_v6 = vand.u32 4294901760, %v7027_v2  ;;  %v7040_v7 = vld [vmem:[%s8034_s1 + $0x40] sm:$0xff]  ;;  %v63_v9 = vand.u32 4294901760, %v7034_v5  ;;  %v22_v13 = vld [vmem:[%s8035_s0 + $0x10] sm:$0xff]  ;;  %863 = vrot.lane.b32.xlu1 %v7027_v2, %s6994_s21  ;;  %v7073_v20 = vand.u32 4294901760, %v33_v17  ;;  %v39_v26 = vsel %vm28_vm0, %v23_v14, 0 }
   0x4   :  { %v20_v8 = vld [vmem:[%s8035_s0] sm:$0xff]  ;;  %v7049_v10 = vand.u32 4294901760, %v7040_v7  ;;  %v7063_v15 = vpack.c.bf16 %v57_v4, %v54_v3  ;;  %v7069_v18 = vsub.f32 %v7017_v0, %v54_v3  ;;  %v7076_v21 = vsub.f32 %v7022_v1, %v57_v4  ;;  %v25_v48 = vld [vmem:[%s8035_s0 + $0x28] sm:$0xff]  ;;  %v26_v53 = vld [vmem:[%s8035_s0 + $0x30] sm:$0xff] }
   0x5   :  { %v30_v11 = vsel %vm28_vm0, %v20_v8, 0  ;;  %v7071_v19 = vpack.c.bf16 %v63_v9, %v60_v6  ;;  %v36_v22 = vsel %vm28_vm0, %v22_v13, 0  ;;  %v7090_v27 = vsub.f32 %v33_v17, %v7073_v20  ;;  %v24_v39 = vld [vmem:[%s8035_s0 + $0x20] sm:$0xff]  ;;  %v27_v58 = vld [vmem:[%s8035_s0 + $0x38] sm:$0xff] }
   0x6   :  { %v7065_v16 = vand.u32 4294901760, %v30_v11  ;;  %6398 = vmatprep.subr.bf16.mxu0 %v7063_v15  ;;  %v206_v24 = vand.u32 4294901760, %v7069_v18  ;;  %v7084_v25 = vand.u32 4294901760, %v36_v22  ;;  %6745 = vmatprep.subr.bf16.mxu1 %v7063_v15  ;;  %v213_v28 = vand.u32 4294901760, %v7076_v21 }
   0x7   :  { %6400 = vmatpush3.bf16.msra.mxu0 %v7063_v15  ;;  %v7093_v29 = vand.u32 4294901760, %v39_v26  ;;  %v7096_v30 = vsub.f32 %v7027_v2, %v60_v6  ;;  %6748 = vmatpush3.bf16.msra.mxu1 %v7063_v15  ;;  %v7108_v34 = vsub.f32 %v7034_v5, %v63_v9  ;;  %v135_v35 = vand.u32 4294901760, %v7090_v27 }
   0x8   :  { %v7081_v23 = vsub.f32 %v30_v11, %v7065_v16  ;;  %6402 = vmatprep.subr.bf16.mxu0 %v7071_v19  ;;  %v207_v32 = vsub.f32 %v7069_v18, %v206_v24  ;;  %v7105_v33 = vsub.f32 %v36_v22, %v7084_v25  ;;  %6746 = vmatprep.subr.bf16.mxu1 %v7071_v19  ;;  %v42_v52 = vsel %vm28_vm0, %v24_v39, 0 }
   0x9   :  { %v214_v36 = vsub.f32 %v7076_v21, %v213_v28  ;;  %v7116_v37 = vsub.f32 %v39_v26, %v7093_v29  ;;  %v220_v38 = vand.u32 4294901760, %v7096_v30  ;;  %861 = vrot.lane.b32.xlu0 %v7022_v1, %s6994_s21  ;;  %865 = vrot.lane.b32.xlu1 %v7034_v5, %s6994_s21  ;;  %v227_v43 = vand.u32 4294901760, %v7108_v34 }
   0xa   :  { %v125_v31 = vand.u32 4294901760, %v7081_v23  ;;  %v208_v41 = vand.u32 4294901760, %v207_v32  ;;  %v145_v42 = vand.u32 4294901760, %v7105_v33  ;;  %v136_v44 = vsub.f32 %v7090_v27, %v135_v35 }
   0xb   :  { %6404 = vmatpush3.bf16.msra.mxu0 %v7071_v19  ;;  %v215_v45 = vand.u32 4294901760, %v214_v36  ;;  %v155_v46 = vand.u32 4294901760, %v7116_v37  ;;  %v221_v47 = vsub.f32 %v7096_v30, %v220_v38  ;;  %6749 = vmatpush3.bf16.msra.mxu1 %v7071_v19  ;;  %v228_v51 = vsub.f32 %v7108_v34, %v227_v43 }
   0xc   :  { %v126_v40 = vsub.f32 %v7081_v23, %v125_v31  ;;  %5811 = vmatprep.subr.mxu0 %v7049_v10  ;;  %v146_v50 = vsub.f32 %v7105_v33, %v145_v42  ;;  %6747 = vmatprep.subr.mxu1 %v7049_v10  ;;  %v137_v54 = vand.u32 4294901760, %v136_v44  ;;  %v7161_v61 = vand.u32 4294901760, %v42_v52 }
   0xd   :  { %v6405_v55 = vpack.c.bf16 %v215_v45, %v208_v41  ;;  %v156_v56 = vsub.f32 %v7116_v37, %v155_v46  ;;  %v222_v57 = vand.u32 4294901760, %v221_v47  ;;  %v229_v60 = vand.u32 4294901760, %v228_v51  ;;  %4320 = vrot.lane.b32.xlu0 %v7017_v0, %s6998_s9  ;;  %v19_v0 = vld [vmem:[%s8034_s1 + $0x38] sm:$0xff] }
   0xe   :  { %v127_v49 = vand.u32 4294901760, %v126_v40  ;;  %v147_v59 = vand.u32 4294901760, %v146_v50  ;;  %v45_v62 = vsel %vm28_vm0, %v25_v48, 0  ;;  %v48_v4 = vsel %vm28_vm0, %v26_v53, 0  ;;  %5929 = vmatprep.mubr.f32.mxu1 %v7161_v61 }
   0xf   :  { %5812 = vmatpush3.msra.mxu0 %v7049_v10  ;;  %v157_v63 = vand.u32 4294901760, %v156_v56  ;;  %v7165_v3 = vand.u32 4294901760, %v45_v62  ;;  %v233_v6 = vsub.f32 %v7040_v7, %v7049_v10  ;;  %6750 = vmatpush3.msra.mxu1 %v7049_v10  ;;  %v6409_v8 = vpack.c.bf16 %v229_v60, %v222_v57 }
  0x10   :  { %5813 = vmatprep.mubr.f32.mxu0 %v127_v49  ;;  %6406 = vmatprep.subr.bf16.mxu0 %v6405_v55  ;;  %v7172_v9 = vsub.f32 %v42_v52, %v7161_v61  ;;  %v7174_v11 = vand.u32 4294901760, %v48_v4  ;;  %v51_v12 = vsel %vm28_vm0, %v27_v58, 0  ;;  %v6413_v51 = vpack.c.bf16 %v7076_v21, %v7069_v18 }
  0x11   :  { %5814 = vmatmul.mubr.f32.vlgmr.msra.gmra.mrb[0].mxu0 %v137_v54  ;;  %v7178_v13 = vsub.f32 %v45_v62, %v7165_v3  ;;  %v7180_v14 = vand.u32 4294901760, %v233_v6  ;;  %v7182_v7 = vand.u32 4294901760, %v51_v12  ;;  %5930 = vmatmul.mubr.f32.vlgmr.msra.gmra.mrb[0].mxu1 %v7165_v3  ;;  %v6417_v54 = vpack.c.bf16 %v7108_v34, %v7096_v30 }
  0x12   :  { %6408 = vmatpush3.bf16.msra.mxu0 %v6405_v55  ;;  %5816 = vmatprep.mubr.f32.mxu0 %v147_v59  ;;  %v165_v17 = vand.u32 4294901760, %v7172_v9  ;;  %v7186_v22 = vsub.f32 %v48_v4, %v7174_v11  ;;  %v6429_v55 = vpack.c.bf16 %v213_v28, %v206_v24  ;;  %v6433_v18 = vpack.c.bf16 %v227_v43, %v220_v38 }
  0x13   :  { %6410 = vmatprep.subr.bf16.mxu0 %v6409_v8  ;;  %v175_v26 = vand.u32 4294901760, %v7178_v13  ;;  %v235_v32 = vsub.f32 %v233_v6, %v7180_v14  ;;  %v7192_v36 = vsub.f32 %v51_v12, %v7182_v7  ;;  %5932 = vmatprep.mubr.f32.mxu1 %v7174_v11  ;;  %v6995_v56 = vmov 0.0|0.0  }
  0x14   :  { %v166_v39 = vsub.f32 %v7172_v9, %v165_v17  ;;  %v185_v40 = vand.u32 4294901760, %v7186_v22  ;;  %6445 = vmatprep.subr.bf16.mxu1 %v6995_v56  ;;  %v6997_v4 = vmov 0.0   ;;  %4324 = vrot.lane.b32.xlu0 %v7022_v1, %s6998_s9 }
  0x15   :  { %5817 = vmatmul.mubr.f32.gmra.mrb[2].mxu0 %v157_v63  ;;  %v176_v41 = vsub.f32 %v7178_v13, %v175_v26  ;;  %v236_v44 = vand.u32 4294901760, %v235_v32  ;;  %v195_v45 = vand.u32 4294901760, %v7192_v36  ;;  %5933 = vmatmul.mubr.f32.gmra.mrb[2].mxu1 %v7182_v7 }
  0x16   :  { %6412 = vmatpush3.bf16.msra.mxu0 %v6409_v8  ;;  %v167_v47 = vand.u32 4294901760, %v166_v39  ;;  %v186_v48 = vsub.f32 %v7186_v22, %v185_v40  ;;  %5943 = vmatprep.mubr.msk.f32.mxu1 %vm6996_vm1, %v6997_v4 }
  0x17   :  { %v177_v49 = vand.u32 4294901760, %v176_v41  ;;  %5833 = vmatprep.subr.mxu0 %v236_v44  ;;  %v196_v50 = vsub.f32 %v7192_v36, %v195_v45 }
  0x18   :  { %5819 = vmatprep.mubr.f32.mxu0 %v167_v47  ;;  %v187_v52 = vand.u32 4294901760, %v186_v48  ;;  %4328 = vrot.lane.b32.xlu0 %v7027_v2, %s6998_s9 }
  0x19   :  { %5820 = vmatmul.mubr.f32.gmra.mrb[4].mxu0 %v177_v49  ;;  %v197_v53 = vand.u32 4294901760, %v196_v50 }
  0x1a   :  { %5822 = vmatprep.mubr.f32.mxu0 %v187_v52  ;;  %5834 = vmatpush3.msra.mxu0 %v236_v44 }
  0x1b   :  { %6414 = vmatprep.subr.bf16.mxu0 %v6413_v51 }
  0x1c   :  { %4332 = vrot.lane.b32.xlu0 %v7034_v5, %s6998_s9 }
  0x1d   :  { %5823 = vmatmul.mubr.f32.gmra.mrb[6].mxu0 %v197_v53 }
  0x1e   :  { %5835 = vmatprep.mubr.f32.mxu0 %v7065_v16 }
  0x21   :  { %5836 = vmatmul.mubr.f32.vlgmr.msra.gmra.mrb[0].mxu0 %v7073_v20 }
  0x22   :  { %6416 = vmatpush3.bf16.msra.mxu0 %v6413_v51  ;;  %5838 = vmatprep.mubr.f32.mxu0 %v7084_v25 }
  0x23   :  { %6418 = vmatprep.subr.bf16.mxu0 %v6417_v54 }
  0x25   :  { %5839 = vmatmul.mubr.f32.gmra.mrb[2].mxu0 %v7093_v29 }
  0x26   :  { %5841 = vmatprep.mubr.f32.mxu0 %v7161_v61  ;;  %6420 = vmatpush3.bf16.msra.mxu0 %v6417_v54 }
  0x27   :  { %5855 = vmatprep.subr.mxu0 %v233_v6 }
  0x29   :  { %5842 = vmatmul.mubr.f32.gmra.mrb[4].mxu0 %v7165_v3 }
  0x2a   :  { %5844 = vmatprep.mubr.f32.mxu0 %v7174_v11  ;;  %5856 = vmatpush3.msra.mxu0 %v233_v6 }
  0x2b   :  { %6422 = vmatprep.subr.bf16.mxu0 %v7063_v15 }
  0x2d   :  { %5845 = vmatmul.mubr.f32.gmra.mrb[6].mxu0 %v7182_v7 }
  0x2e   :  { %5857 = vmatprep.mubr.f32.mxu0 %v7081_v23 }
  0x31   :  { %5858 = vmatmul.mubr.f32.vlgmr.msra.gmra.mrb[0].mxu0 %v7090_v27 }
  0x32   :  { %6424 = vmatpush3.bf16.msra.mxu0 %v7063_v15  ;;  %5860 = vmatprep.mubr.f32.mxu0 %v7105_v33 }
  0x33   :  { %6426 = vmatprep.subr.bf16.mxu0 %v7071_v19 }
  0x35   :  { %5861 = vmatmul.mubr.f32.gmra.mrb[2].mxu0 %v7116_v37 }
  0x36   :  { %5863 = vmatprep.mubr.f32.mxu0 %v7172_v9  ;;  %6428 = vmatpush3.bf16.msra.mxu0 %v7071_v19 }
  0x37   :  { %5877 = vmatprep.subr.mxu0 %v7049_v10 }
  0x39   :  { %5864 = vmatmul.mubr.f32.gmra.mrb[4].mxu0 %v7178_v13 }
  0x3a   :  { %5866 = vmatprep.mubr.f32.mxu0 %v7186_v22  ;;  %5878 = vmatpush3.msra.mxu0 %v7049_v10 }
  0x3b   :  { %6430 = vmatprep.subr.bf16.mxu0 %v6429_v55 }
  0x3d   :  { %5867 = vmatmul.mubr.f32.gmra.mrb[6].mxu0 %v7192_v36 }
  0x3e   :  { %5879 = vmatprep.mubr.f32.mxu0 %v125_v31 }
  0x41   :  { %5880 = vmatmul.mubr.f32.vlgmr.msra.gmra.mrb[0].mxu0 %v135_v35 }
  0x42   :  { %6432 = vmatpush3.bf16.msra.mxu0 %v6429_v55  ;;  %5882 = vmatprep.mubr.f32.mxu0 %v145_v42 }
  0x43   :  { %6434 = vmatprep.subr.bf16.mxu0 %v6433_v18 }
  0x45   :  { %5883 = vmatmul.mubr.f32.gmra.mrb[2].mxu0 %v155_v46 }
  0x46   :  { %5885 = vmatprep.mubr.f32.mxu0 %v165_v17  ;;  %6436 = vmatpush3.bf16.msra.mxu0 %v6433_v18 }
  0x47   :  { %5899 = vmatprep.subr.mxu0 %v7180_v14 }
  0x49   :  { %5886 = vmatmul.mubr.f32.gmra.mrb[4].mxu0 %v175_v26 }
  0x4a   :  { %5888 = vmatprep.mubr.f32.mxu0 %v185_v40  ;;  %5900 = vmatpush3.msra.mxu0 %v7180_v14 }
  0x4b   :  { %6438 = vmatprep.subr.bf16.mxu0 %v7063_v15 }
  0x4d   :  { %5889 = vmatmul.mubr.f32.gmra.mrb[6].mxu0 %v195_v45 }
  0x4e   :  { %5901 = vmatprep.mubr.f32.mxu0 %v7065_v16 }
  0x51   :  { %5902 = vmatmul.mubr.f32.vlgmr.msra.gmra.mrb[0].mxu0 %v7073_v20 }
  0x52   :  { %6440 = vmatpush3.bf16.msra.mxu0 %v7063_v15  ;;  %5904 = vmatprep.mubr.f32.mxu0 %v7084_v25 }
  0x53   :  { %6442 = vmatprep.subr.bf16.mxu0 %v7071_v19 }
  0x55   :  { %5905 = vmatmul.mubr.f32.gmra.mrb[2].mxu0 %v7093_v29 }
  0x56   :  { %5907 = vmatprep.mubr.f32.mxu0 %v7161_v61  ;;  %6444 = vmatpush3.bf16.msra.mxu0 %v7071_v19 }
  0x57   :  { %5921 = vmatprep.subr.mxu0 %v7049_v10 }
  0x59   :  { %5908 = vmatmul.mubr.f32.gmra.mrb[4].mxu0 %v7165_v3 }
  0x5a   :  { %5910 = vmatprep.mubr.f32.mxu0 %v7174_v11  ;;  %5922 = vmatpush3.msra.mxu0 %v7049_v10 }
  0x5b   :  { %6553 = vmatprep.subr.bf16.mxu0 %v6995_v56 }
  0x5d   :  { %5911 = vmatmul.mubr.f32.gmra.mrb[6].mxu0 %v7182_v7 }
  0x5e   :  { %5923 = vmatprep.mubr.f32.mxu0 %v7065_v16 }
  0x61   :  { %5924 = vmatmul.mubr.f32.vlgmr.msra.gmra.mrb[0].mxu0 %v7073_v20 }
  0x62   :  { %5926 = vmatprep.mubr.f32.mxu0 %v7084_v25 }
  0x65   :  { %5927 = vmatmul.mubr.f32.gmra.mrb[2].mxu0 %v7093_v29 }
  0x66   :  { %6141 = vmatprep.mubr.msk.f32.mxu0 %vm6996_vm1, %v6997_v4 }
  0x74   :  { %v860_v15 = vpop.permute.xlu0 %859 }
  0x75   :  { %v875_v19 = vand.u32 4294901760, %v860_v15  ;;  %v864_v24 = vpop.permute.xlu1 %863 }
  0x76   :  { %v881_v33 = vand.u32 4294901760, %v864_v24 }
  0x77   :  { %v955_v21 = vsub.f32 %v860_v15, %v875_v19 }
  0x78   :  { %v969_v37 = vsub.f32 %v864_v24, %v881_v33 }
  0x79   :  { %v956_v23 = vand.u32 4294901760, %v955_v21 }
  0x7a   :  { %v970_v42 = vand.u32 4294901760, %v969_v37 }
  0x7b   :  { %v862_v27 = vpop.permute.xlu0 %861  ;;  %v957_v30 = vsub.f32 %v955_v21, %v956_v23  ;;  %v866_v10 = vpop.permute.xlu1 %865 }
  0x7c   :  { %v878_v28 = vand.u32 4294901760, %v862_v27  ;;  %v884_v35 = vand.u32 4294901760, %v866_v10  ;;  %v971_v58 = vsub.f32 %v969_v37, %v970_v42 }
  0x7d   :  { %v958_v16 = vand.u32 4294901760, %v957_v30 }
  0x7e   :  { %v962_v31 = vsub.f32 %v862_v27, %v878_v28  ;;  %v7273_v20 = vpack.c.bf16 %v878_v28, %v875_v19  ;;  %v976_v29 = vsub.f32 %v866_v10, %v884_v35  ;;  %v7285_v60 = vpack.c.bf16 %v884_v35, %v881_v33 }
  0x7f   :  { %v972_v3 = vand.u32 4294901760, %v971_v58 }
  0x80   :  { %v963_v34 = vand.u32 4294901760, %v962_v31  ;;  %v7275_v38 = vpack.c.bf16 %v962_v31, %v955_v21  ;;  %v977_v57 = vand.u32 4294901760, %v976_v29  ;;  %6447 = vmatpush3.bf16.msra.mxu1 %v7273_v20  ;;  %6555 = vmatpush3.bf16.msra.mxu0 %v7273_v20  ;;  %v7287_v61 = vpack.c.bf16 %v976_v29, %v969_v37 }
  0x81   :  { %6448 = vmatprep.subr.bf16.mxu1 %v6995_v56  ;;  %6556 = vmatprep.subr.bf16.mxu0 %v6995_v56 }
  0x82   :  { %v964_v25 = vsub.f32 %v962_v31, %v963_v34  ;;  %v7277_v46 = vpack.c.bf16 %v963_v34, %v956_v23  ;;  %v978_v62 = vsub.f32 %v976_v29, %v977_v57  ;;  %v7290_v63 = vpack.c.bf16 %v977_v57, %v970_v42 }
  0x84   :  { %v965_v43 = vand.u32 4294901760, %v964_v25  ;;  %v979_v6 = vand.u32 4294901760, %v978_v62  ;;  %6450 = vmatpush3.bf16.msra.mxu1 %v7285_v60  ;;  %6558 = vmatpush3.bf16.msra.mxu0 %v7285_v60 }
  0x85   :  { %6451 = vmatprep.subr.bf16.mxu1 %v6995_v56  ;;  %6559 = vmatprep.subr.bf16.mxu0 %v6995_v56 }
  0x86   :  { %v7283_v59 = vpack.c.bf16 %v965_v43, %v958_v16  ;;  %v7301_v8 = vpack.c.bf16 %v979_v6, %v972_v3 }
  0xe4   :  { %v5931_v9 = vpop.f32.mrb[0].mxu1 }
  0xe5   :  { %v830_v11 = vpop.f32.mrb[1].mxu1 }
  0xe8   :  { %v5934_v12 = vpop.f32.mrb[2].mxu1 }
  0xe9   :  { %v842_v13 = vpop.f32.mrb[3].mxu1 }
 0x12c   :  { %v5909_v14 = vpop.f32.mrb[4].mxu0 }
 0x12d   :  { %v7303_v7 = vadd.f32 %v5931_v9, %v5909_v14  ;;  %v712_v17 = vpop.f32.mrb[5].mxu0  ;;  %v17_v14 = vld [vmem:[%s8034_s1 + $0x18] sm:$0xff] }
 0x12e   :  { %v7305_v22 = vadd.f32 %v830_v11, %v712_v17  ;;  %v18_v17 = vld [vmem:[%s8034_s1 + $0x28] sm:$0xff] }
 0x130   :  { %v5912_v26 = vpop.f32.mrb[6].mxu0 }
 0x131   :  { %v7307_v32 = vadd.f32 %v5934_v12, %v5912_v26  ;;  %v724_v36 = vpop.f32.mrb[7].mxu0 }
 0x132   :  { %v7309_v39 = vadd.f32 %v842_v13, %v724_v36  ;;  %v16_v13 = vld [vmem:[%s8034_s1 + $0x8] sm:$0xff] }
 0x133   :  { %4322 = vrot.lane.b32.xlu1 %v16_v13, %s6998_s9 }
 0x134   :  { %v5925_v40 = vpop.f32.mrb[0].mxu0 }
 0x135   :  { %v806_v41 = vpop.f32.mrb[1].mxu0 }
 0x136   :  { %6946 = vtanh.f32 %v806_v41 }
 0x137   :  { %4326 = vrot.lane.b32.xlu1 %v17_v14, %s6998_s9 }
 0x138   :  { %v7311_v44 = vpop.f32.mrb[2].mxu0 }
 0x139   :  { %v7313_v45 = vpop.f32.mrb[3].mxu0 }
 0x13b   :  { %4330 = vrot.lane.b32.xlu1 %v18_v17, %s6998_s9 }
 0x13f   :  { %4334 = vrot.lane.b32.xlu1 %v19_v0, %s6998_s9 }
 0x140   :  { %v6947_v47 = vpop.eup %6946 }
 0x141   :  { %854 = vst.msk [vmem:[#allocation2] sm:$0xff] %vm853_vm2, %v6947_v47  ;;  %v872_v48 = vsel %vm853_vm2, %v6947_v47, 0 }
 0x142   :  { %v943_v49 = vand.u32 4294901760, %v872_v48 }
 0x144   :  { %v944_v50 = vsub.f32 %v872_v48, %v943_v49 }
 0x146   :  { %v945_v51 = vand.u32 4294901760, %v944_v50 }
 0x148   :  { %v946_v52 = vsub.f32 %v944_v50, %v945_v51  ;;  %v4308_v14 = vld [vmem:[#allocation2] sm:$0xff] }
 0x14a   :  { %v947_v53 = vand.u32 4294901760, %v946_v52 }
 0x14c   :  { %5944 = vmatmul.mubr.f32.vlgmr.msra.gmra.mrb[4].mxu1 %v947_v53 }
 0x14d   :  { %6453 = vmatpush3.bf16.msra.mxu1 %v7283_v59  ;;  %5954 = vmatprep.mubr.msk.f32.mxu1 %vm6996_vm1, %v6997_v4 }
 0x14e   :  { %6454 = vmatprep.subr.bf16.mxu1 %v6995_v56 }
 0x151   :  { %6456 = vmatpush3.bf16.msra.mxu1 %v7301_v8 }
 0x152   :  { %6457 = vmatprep.subr.bf16.mxu1 %v6995_v56 }
 0x154   :  { %5955 = vmatmul.mubr.f32.vlgmr.msra.gmra.mrb[4].mxu1 %v943_v49 }
 0x155   :  { %6459 = vmatpush3.bf16.msra.mxu1 %v7275_v38  ;;  %5965 = vmatprep.mubr.msk.f32.mxu1 %vm6996_vm1, %v6997_v4 }
 0x156   :  { %6460 = vmatprep.subr.bf16.mxu1 %v6995_v56 }
 0x159   :  { %6462 = vmatpush3.bf16.msra.mxu1 %v7287_v61 }
 0x15a   :  { %6463 = vmatprep.subr.bf16.mxu1 %v6995_v56 }
 0x15c   :  { %5966 = vmatmul.mubr.f32.vlgmr.msra.gmra.mrb[4].mxu1 %v944_v50 }
 0x15d   :  { %6465 = vmatpush3.bf16.msra.mxu1 %v7273_v20  ;;  %5976 = vmatprep.mubr.msk.f32.mxu1 %vm6996_vm1, %v6997_v4 }
 0x15e   :  { %6466 = vmatprep.subr.bf16.mxu1 %v6995_v56 }
 0x161   :  { %6468 = vmatpush3.bf16.msra.mxu1 %v7285_v60 }
 0x162   :  { %6469 = vmatprep.subr.bf16.mxu1 %v6995_v56 }
 0x164   :  { %5977 = vmatmul.mubr.f32.vlgmr.msra.gmra.mrb[4].mxu1 %v945_v51 }
 0x165   :  { %6471 = vmatpush3.bf16.msra.mxu1 %v7277_v46  ;;  %5987 = vmatprep.mubr.msk.f32.mxu1 %vm6996_vm1, %v6997_v4 }
 0x166   :  { %6472 = vmatprep.subr.bf16.mxu1 %v6995_v56 }
 0x169   :  { %6474 = vmatpush3.bf16.msra.mxu1 %v7290_v63 }
 0x16a   :  { %6475 = vmatprep.subr.bf16.mxu1 %v6995_v56 }
 0x16c   :  { %5988 = vmatmul.mubr.f32.vlgmr.msra.gmra.mrb[4].mxu1 %v943_v49 }
 0x16d   :  { %6477 = vmatpush3.bf16.msra.mxu1 %v7273_v20  ;;  %5998 = vmatprep.mubr.msk.f32.mxu1 %vm6996_vm1, %v6997_v4 }
 0x16e   :  { %6478 = vmatprep.subr.bf16.mxu1 %v6995_v56 }
 0x171   :  { %6480 = vmatpush3.bf16.msra.mxu1 %v7285_v60 }
 0x172   :  { %6481 = vmatprep.subr.bf16.mxu1 %v6995_v56 }
 0x174   :  { %5999 = vmatmul.mubr.f32.vlgmr.msra.gmra.mrb[4].mxu1 %v943_v49 }
 0x175   :  { %6483 = vmatpush3.bf16.msra.mxu1 %v7273_v20  ;;  %6009 = vmatprep.mubr.msk.f32.mxu1 %vm6996_vm1, %v6997_v4 }
 0x176   :  { %6484 = vmatprep.subr.bf16.mxu1 %v6995_v56 }
 0x179   :  { %6486 = vmatpush3.bf16.msra.mxu1 %v7285_v60 }
 0x17a   :  { %6487 = vmatprep.subr.bf16.mxu1 %v6995_v56 }
 0x1a5   :  { %v7532_v5 = vpop.permute.xlu1 %4322 }
 0x1a9   :  { %v7535_v50 = vpop.permute.xlu1 %4326 }
 0x247   :  { %v1355_v54 = vpop.f32.mrb[4].mxu1 }
 0x248   :  { %v1359_v55 = vadd.f32 %v5925_v40, %v1355_v54  ;;  %v6000_v18 = vpop.f32.mrb[5].mxu1 }
 0x249   :  { %v7540_v18 = vpop.permute.xlu1 %4330 }
 0x24a   :  { %6948 = vtanh.f32 %v1359_v55 }
 0x254   :  { %v6949_v15 = vpop.eup %6948 }
 0x255   :  { %1361 = vst.msk [vmem:[#allocation2 + $0x8] sm:$0xff] %vm853_vm2, %v6949_v15  ;;  %v1363_v19 = vsel %vm853_vm2, %v6949_v15, 0 }
 0x256   :  { %v1434_v21 = vand.u32 4294901760, %v1363_v19 }
 0x258   :  { %v1435_v23 = vsub.f32 %v1363_v19, %v1434_v21 }
 0x25a   :  { %v1436_v24 = vand.u32 4294901760, %v1435_v23 }
 0x25c   :  { %v1437_v27 = vsub.f32 %v1435_v23, %v1436_v24 }
 0x25e   :  { %v1438_v28 = vand.u32 4294901760, %v1437_v27 }
 0x260   :  { %6010 = vmatmul.mubr.f32.vlgmr.msra.gmra.mrb[6].mxu1 %v1438_v28 }
 0x261   :  { %6489 = vmatpush3.bf16.msra.mxu1 %v7283_v59  ;;  %6020 = vmatprep.mubr.msk.f32.mxu1 %vm6996_vm1, %v6997_v4 }
 0x262   :  { %6490 = vmatprep.subr.bf16.mxu1 %v6995_v56 }
 0x265   :  { %6492 = vmatpush3.bf16.msra.mxu1 %v7301_v8 }
 0x266   :  { %6493 = vmatprep.subr.bf16.mxu1 %v6995_v56 }
 0x268   :  { %6021 = vmatmul.mubr.f32.vlgmr.msra.gmra.mrb[6].mxu1 %v1434_v21 }
 0x269   :  { %6495 = vmatpush3.bf16.msra.mxu1 %v7275_v38  ;;  %6031 = vmatprep.mubr.msk.f32.mxu1 %vm6996_vm1, %v6997_v4 }
 0x26a   :  { %6496 = vmatprep.subr.bf16.mxu1 %v6995_v56 }
 0x26d   :  { %6498 = vmatpush3.bf16.msra.mxu1 %v7287_v61 }
 0x26e   :  { %6499 = vmatprep.subr.bf16.mxu1 %v6995_v56 }
 0x270   :  { %6032 = vmatmul.mubr.f32.vlgmr.msra.gmra.mrb[6].mxu1 %v1435_v23 }
 0x271   :  { %6501 = vmatpush3.bf16.msra.mxu1 %v7273_v20  ;;  %6042 = vmatprep.mubr.msk.f32.mxu1 %vm6996_vm1, %v6997_v4 }
 0x272   :  { %6502 = vmatprep.subr.bf16.mxu1 %v6995_v56 }
 0x275   :  { %6504 = vmatpush3.bf16.msra.mxu1 %v7285_v60 }
 0x276   :  { %6505 = vmatprep.subr.bf16.mxu1 %v6995_v56 }
 0x278   :  { %6043 = vmatmul.mubr.f32.vlgmr.msra.gmra.mrb[6].mxu1 %v1436_v24 }
 0x279   :  { %6507 = vmatpush3.bf16.msra.mxu1 %v7277_v46  ;;  %6053 = vmatprep.mubr.msk.f32.mxu1 %vm6996_vm1, %v6997_v4 }
 0x27a   :  { %6508 = vmatprep.subr.bf16.mxu1 %v6995_v56 }
 0x27d   :  { %6510 = vmatpush3.bf16.msra.mxu1 %v7290_v63 }
 0x27e   :  { %6511 = vmatprep.subr.bf16.mxu1 %v6995_v56 }
 0x280   :  { %6054 = vmatmul.mubr.f32.vlgmr.msra.gmra.mrb[6].mxu1 %v1434_v21 }
 0x281   :  { %6513 = vmatpush3.bf16.msra.mxu1 %v7273_v20  ;;  %6064 = vmatprep.mubr.msk.f32.mxu1 %vm6996_vm1, %v6997_v4 }
 0x282   :  { %6514 = vmatprep.subr.bf16.mxu1 %v6995_v56 }
 0x285   :  { %6516 = vmatpush3.bf16.msra.mxu1 %v7285_v60 }
 0x286   :  { %6517 = vmatprep.subr.bf16.mxu1 %v6995_v56 }
 0x288   :  { %6065 = vmatmul.mubr.f32.vlgmr.msra.gmra.mrb[6].mxu1 %v1434_v21  ;;  %v7543_v21 = vpop.permute.xlu1 %4334 }
 0x289   :  { %6519 = vmatpush3.bf16.msra.mxu1 %v7273_v20  ;;  %6075 = vmatprep.mubr.msk.f32.mxu1 %vm6996_vm1, %v6997_v4 }
 0x28a   :  { %6520 = vmatprep.subr.bf16.mxu1 %v6995_v56 }
 0x28d   :  { %6522 = vmatpush3.bf16.msra.mxu1 %v7285_v60 }
 0x28e   :  { %6523 = vmatprep.subr.bf16.mxu1 %v6995_v56 }
 0x35b   :  { %v1846_v30 = vpop.f32.mrb[6].mxu1 }
 0x35c   :  { %v1850_v31 = vadd.f32 %v1846_v30, %v7313_v45  ;;  %v6066_v10 = vpop.f32.mrb[7].mxu1 }
 0x35e   :  { %6950 = vtanh.f32 %v1850_v31 }
 0x368   :  { %v6951_v33 = vpop.eup %6950 }
 0x369   :  { %1852 = vst.msk [vmem:[#allocation2 + $0x10] sm:$0xff] %vm853_vm2, %v6951_v33  ;;  %v1854_v34 = vsel %vm853_vm2, %v6951_v33, 0 }
 0x36a   :  { %v1925_v35 = vand.u32 4294901760, %v1854_v34 }
 0x36c   :  { %v1926_v16 = vsub.f32 %v1854_v34, %v1925_v35 }
 0x36e   :  { %v1927_v37 = vand.u32 4294901760, %v1926_v16 }
 0x370   :  { %v1928_v25 = vsub.f32 %v1926_v16, %v1927_v37 }
 0x372   :  { %v1929_v29 = vand.u32 4294901760, %v1928_v25 }
 0x374   :  { %6076 = vmatmul.mubr.f32.vlgmr.msra.gmra.mrb[8].mxu1 %v1929_v29 }
 0x375   :  { %6525 = vmatpush3.bf16.msra.mxu1 %v7283_v59  ;;  %6086 = vmatprep.mubr.msk.f32.mxu1 %vm6996_vm1, %v6997_v4 }
 0x376   :  { %6526 = vmatprep.subr.bf16.mxu1 %v6995_v56 }
 0x379   :  { %6528 = vmatpush3.bf16.msra.mxu1 %v7301_v8 }
 0x37a   :  { %6529 = vmatprep.subr.bf16.mxu1 %v6995_v56 }
 0x37c   :  { %6087 = vmatmul.mubr.f32.vlgmr.msra.gmra.mrb[8].mxu1 %v1925_v35 }
 0x37d   :  { %6531 = vmatpush3.bf16.msra.mxu1 %v7275_v38  ;;  %6097 = vmatprep.mubr.msk.f32.mxu1 %vm6996_vm1, %v6997_v4 }
 0x37e   :  { %6532 = vmatprep.subr.bf16.mxu1 %v6995_v56 }
 0x381   :  { %6534 = vmatpush3.bf16.msra.mxu1 %v7287_v61 }
 0x382   :  { %6535 = vmatprep.subr.bf16.mxu1 %v6995_v56 }
 0x384   :  { %6098 = vmatmul.mubr.f32.vlgmr.msra.gmra.mrb[8].mxu1 %v1926_v16 }
 0x385   :  { %6537 = vmatpush3.bf16.msra.mxu1 %v7273_v20  ;;  %6108 = vmatprep.mubr.msk.f32.mxu1 %vm6996_vm1, %v6997_v4 }
 0x386   :  { %6538 = vmatprep.subr.bf16.mxu1 %v6995_v56 }
 0x389   :  { %6540 = vmatpush3.bf16.msra.mxu1 %v7285_v60 }
 0x38a   :  { %6541 = vmatprep.subr.bf16.mxu1 %v6995_v56 }
 0x38c   :  { %6109 = vmatmul.mubr.f32.vlgmr.msra.gmra.mrb[8].mxu1 %v1927_v37 }
 0x38d   :  { %6543 = vmatpush3.bf16.msra.mxu1 %v7277_v46  ;;  %6119 = vmatprep.mubr.msk.f32.mxu1 %vm6996_vm1, %v6997_v4 }
 0x38e   :  { %6544 = vmatprep.subr.bf16.mxu1 %v6995_v56 }
 0x391   :  { %6546 = vmatpush3.bf16.msra.mxu1 %v7290_v63 }
 0x392   :  { %6547 = vmatprep.subr.bf16.mxu1 %v6995_v56 }
 0x394   :  { %6120 = vmatmul.mubr.f32.vlgmr.msra.gmra.mrb[8].mxu1 %v1925_v35 }
 0x395   :  { %6549 = vmatpush3.bf16.msra.mxu1 %v7273_v20  ;;  %6130 = vmatprep.mubr.msk.f32.mxu1 %vm6996_vm1, %v6997_v4 }
 0x396   :  { %6550 = vmatprep.subr.bf16.mxu1 %v6995_v56 }
 0x399   :  { %6552 = vmatpush3.bf16.msra.mxu1 %v7285_v60 }
 0x39a   :  { %6589 = vmatprep.subr.bf16.mxu1 %v6995_v56 }
 0x39c   :  { %6131 = vmatmul.mubr.f32.vlgmr.msra.gmra.mrb[8].mxu1 %v1925_v35 }
 0x39d   :  { %6591 = vmatpush3.bf16.msra.mxu1 %v7273_v20  ;;  %6207 = vmatprep.mubr.msk.f32.mxu1 %vm6996_vm1, %v6997_v4 }
 0x39e   :  { %6592 = vmatprep.subr.bf16.mxu1 %v6995_v56 }
 0x3a1   :  { %6594 = vmatpush3.bf16.msra.mxu1 %v7285_v60 }
 0x3a2   :  { %6595 = vmatprep.subr.bf16.mxu1 %v6995_v56 }
 0x46f   :  { %v2337_v42 = vpop.f32.mrb[8].mxu1 }
 0x470   :  { %v2341_v43 = vadd.f32 %v7311_v44, %v2337_v42  ;;  %v6132_v57 = vpop.f32.mrb[9].mxu1 }
 0x472   :  { %6952 = vtanh.f32 %v2341_v43  ;;  %v4377_v43 = vand.u32 4294901760, %v7535_v50 }
 0x47c   :  { %v6953_v58 = vpop.eup %6952 }
 0x47d   :  { %2343 = vst.msk [vmem:[#allocation2 + $0x18] sm:$0xff] %vm853_vm2, %v6953_v58  ;;  %v2345_v62 = vsel %vm853_vm2, %v6953_v58, 0  ;;  %v7584_v58 = vsub.f32 %v7535_v50, %v4377_v43 }
 0x47e   :  { %v2416_v3 = vand.u32 4294901760, %v2345_v62 }
 0x480   :  { %v2417_v6 = vsub.f32 %v2345_v62, %v2416_v3  ;;  %v4381_v62 = vand.u32 4294901760, %v7540_v18 }
 0x482   :  { %v2418_v9 = vand.u32 4294901760, %v2417_v6 }
 0x484   :  { %v2419_v11 = vsub.f32 %v2417_v6, %v2418_v9 }
 0x486   :  { %v2420_v12 = vand.u32 4294901760, %v2419_v11  ;;  %v7597_v11 = vsub.f32 %v7540_v18, %v4381_v62 }
 0x488   :  { %6142 = vmatmul.mubr.f32.vlgmr.msra.gmra.mrb[8].mxu0 %v2420_v12 }
 0x489   :  { %6561 = vmatpush3.bf16.msra.mxu0 %v7283_v59  ;;  %6152 = vmatprep.mubr.msk.f32.mxu0 %vm6996_vm1, %v6997_v4 }
 0x48a   :  { %6562 = vmatprep.subr.bf16.mxu0 %v6995_v56 }
 0x48d   :  { %6564 = vmatpush3.bf16.msra.mxu0 %v7301_v8 }
 0x48e   :  { %6565 = vmatprep.subr.bf16.mxu0 %v6995_v56 }
 0x490   :  { %6153 = vmatmul.mubr.f32.vlgmr.msra.gmra.mrb[8].mxu0 %v2416_v3 }
 0x491   :  { %6567 = vmatpush3.bf16.msra.mxu0 %v7275_v38  ;;  %6163 = vmatprep.mubr.msk.f32.mxu0 %vm6996_vm1, %v6997_v4 }
 0x492   :  { %6568 = vmatprep.subr.bf16.mxu0 %v6995_v56 }
 0x495   :  { %6570 = vmatpush3.bf16.msra.mxu0 %v7287_v61 }
 0x496   :  { %6571 = vmatprep.subr.bf16.mxu0 %v6995_v56 }
 0x498   :  { %6164 = vmatmul.mubr.f32.vlgmr.msra.gmra.mrb[8].mxu0 %v2417_v6 }
 0x499   :  { %6573 = vmatpush3.bf16.msra.mxu0 %v7273_v20  ;;  %6174 = vmatprep.mubr.msk.f32.mxu0 %vm6996_vm1, %v6997_v4 }
 0x49a   :  { %6574 = vmatprep.subr.bf16.mxu0 %v6995_v56 }
 0x49d   :  { %6576 = vmatpush3.bf16.msra.mxu0 %v7285_v60 }
 0x49e   :  { %6577 = vmatprep.subr.bf16.mxu0 %v6995_v56 }
 0x4a0   :  { %6175 = vmatmul.mubr.f32.vlgmr.msra.gmra.mrb[8].mxu0 %v2418_v9 }
 0x4a1   :  { %6579 = vmatpush3.bf16.msra.mxu0 %v7277_v46  ;;  %6185 = vmatprep.mubr.msk.f32.mxu0 %vm6996_vm1, %v6997_v4 }
 0x4a2   :  { %6580 = vmatprep.subr.bf16.mxu0 %v6995_v56 }
 0x4a5   :  { %6582 = vmatpush3.bf16.msra.mxu0 %v7290_v63 }
 0x4a6   :  { %6583 = vmatprep.subr.bf16.mxu0 %v6995_v56 }
 0x4a8   :  { %6186 = vmatmul.mubr.f32.vlgmr.msra.gmra.mrb[8].mxu0 %v2416_v3 }
 0x4a9   :  { %6585 = vmatpush3.bf16.msra.mxu0 %v7273_v20  ;;  %6196 = vmatprep.mubr.msk.f32.mxu0 %vm6996_vm1, %v6997_v4 }
 0x4aa   :  { %6586 = vmatprep.subr.bf16.mxu0 %v6995_v56 }
 0x4ad   :  { %6588 = vmatpush3.bf16.msra.mxu0 %v7285_v60 }
 0x4ae   :  { %6625 = vmatprep.subr.bf16.mxu0 %v6995_v56 }
 0x4b0   :  { %6197 = vmatmul.mubr.f32.vlgmr.msra.gmra.mrb[8].mxu0 %v2416_v3  ;;  %v4385_v3 = vand.u32 4294901760, %v7543_v21 }
 0x4b1   :  { %6627 = vmatpush3.bf16.msra.mxu0 %v7273_v20  ;;  %6273 = vmatprep.mubr.msk.f32.mxu0 %vm6996_vm1, %v6997_v4 }
 0x4b2   :  { %6628 = vmatprep.subr.bf16.mxu0 %v6995_v56  ;;  %v7601_v12 = vsub.f32 %v7543_v21, %v4385_v3 }
 0x4b5   :  { %6630 = vmatpush3.bf16.msra.mxu0 %v7285_v60 }
 0x4b6   :  { %6631 = vmatprep.subr.bf16.mxu0 %v6995_v56 }
 0x583   :  { %v2828_v26 = vpop.f32.mrb[8].mxu0 }
 0x584   :  { %v2832_v1 = vadd.f32 %v7305_v22, %v2828_v26  ;;  %v6198_v36 = vpop.f32.mrb[9].mxu0  ;;  %v4321_v22 = vpop.permute.xlu0 %4320 }
 0x585   :  { %v4337_v49 = vsel %vm4336_vm3, %v4321_v22, %v7532_v5  ;;  %v4350_v36 = vsel %vm853_vm2, %v4308_v14, 0  ;;  %v4548_v14 = vand.u32 4294901760, %v7584_v58 }
 0x586   :  { %6954 = vtanh.f32 %v2832_v1  ;;  %v4375_v53 = vand.u32 4294901760, %v4337_v49  ;;  %v6717_v1 = vpack.c.bf16 %v7601_v12, %v7597_v11 }
 0x588   :  { %v4325_v51 = vpop.permute.xlu0 %4324  ;;  %v7589_v6 = vsub.f32 %v4337_v49, %v4375_v53  ;;  %v4311_v49 = vld [vmem:[#allocation2 + $0x18] sm:$0xff] }
 0x589   :  { %v4338_v52 = vsel %vm4336_vm3, %v4325_v51, %v7535_v50 }
 0x58a   :  { %v4379_v54 = vand.u32 4294901760, %v4338_v52 }
 0x58c   :  { %v7538_v55 = vpack.c.bf16 %v4379_v54, %v4375_v53  ;;  %v4329_v15 = vpop.permute.xlu0 %4328  ;;  %v7591_v9 = vsub.f32 %v4338_v52, %v4379_v54  ;;  %v4359_v53 = vsel %vm853_vm2, %v4311_v49, 0 }
 0x58d   :  { %v4339_v19 = vsel %vm4336_vm3, %v4329_v15, %v7540_v18  ;;  %v7640_v15 = vand.u32 4294901760, %v4359_v53 }
 0x58e   :  { %v4383_v27 = vand.u32 4294901760, %v4339_v19  ;;  %v6715_v17 = vpack.c.bf16 %v7591_v9, %v7589_v6 }
 0x590   :  { %v6955_v40 = vpop.eup %6954  ;;  %v4333_v23 = vpop.permute.xlu0 %4332  ;;  %v7607_v0 = vsub.f32 %v4339_v19, %v4383_v27 }
 0x591   :  { %2834 = vst.msk [vmem:[#allocation2 + $0x20] sm:$0xff] %vm853_vm2, %v6955_v40  ;;  %v2836_v41 = vsel %vm853_vm2, %v6955_v40, 0  ;;  %v4340_v24 = vsel %vm4336_vm3, %v4333_v23, %v7543_v21  ;;  %v4309_v40 = vld [vmem:[#allocation2 + $0x8] sm:$0xff]  ;;  %v7646_v23 = vsub.f32 %v4359_v53, %v7640_v15 }
 0x592   :  { %v2907_v2 = vand.u32 4294901760, %v2836_v41  ;;  %v4387_v28 = vand.u32 4294901760, %v4340_v24 }
 0x594   :  { %v2908_v44 = vsub.f32 %v2836_v41, %v2907_v2  ;;  %v7546_v30 = vpack.c.bf16 %v4387_v28, %v4383_v27  ;;  %v7609_v26 = vsub.f32 %v4340_v24, %v4387_v28 }
 0x596   :  { %v2909_v45 = vand.u32 4294901760, %v2908_v44  ;;  %v6719_v41 = vpack.c.bf16 %v7609_v26, %v7607_v0  ;;  %v4578_v50 = vand.u32 4294901760, %v7609_v26 }
 0x598   :  { %v2910_v47 = vsub.f32 %v2908_v44, %v2909_v45  ;;  %v4312_v54 = vld [vmem:[#allocation2 + $0x20] sm:$0xff] }
 0x599   :  { %v4362_v19 = vsel %vm853_vm2, %v4312_v54, 0 }
 0x59a   :  { %v2911_v48 = vand.u32 4294901760, %v2910_v47  ;;  %v7648_v24 = vand.u32 4294901760, %v4362_v19 }
 0x59c   :  { %6208 = vmatmul.mubr.f32.vlgmr.msra.gmra.mrb[10].mxu1 %v2911_v48  ;;  %v7654_v28 = vsub.f32 %v4362_v19, %v7648_v24 }
 0x59d   :  { %6597 = vmatpush3.bf16.msra.mxu1 %v7283_v59  ;;  %6218 = vmatprep.mubr.msk.f32.mxu1 %vm6996_vm1, %v6997_v4 }
 0x59e   :  { %6598 = vmatprep.subr.bf16.mxu1 %v6995_v56 }
 0x5a1   :  { %6600 = vmatpush3.bf16.msra.mxu1 %v7301_v8 }
 0x5a2   :  { %6601 = vmatprep.subr.bf16.mxu1 %v6995_v56 }
 0x5a4   :  { %6219 = vmatmul.mubr.f32.vlgmr.msra.gmra.mrb[10].mxu1 %v2907_v2 }
 0x5a5   :  { %6603 = vmatpush3.bf16.msra.mxu1 %v7275_v38  ;;  %6229 = vmatprep.mubr.msk.f32.mxu1 %vm6996_vm1, %v6997_v4 }
 0x5a6   :  { %6604 = vmatprep.subr.bf16.mxu1 %v6995_v56 }
 0x5a9   :  { %6606 = vmatpush3.bf16.msra.mxu1 %v7287_v61 }
 0x5aa   :  { %6607 = vmatprep.subr.bf16.mxu1 %v6995_v56 }
 0x5ac   :  { %6230 = vmatmul.mubr.f32.vlgmr.msra.gmra.mrb[10].mxu1 %v2908_v44  ;;  %v4353_v44 = vsel %vm853_vm2, %v4309_v40, 0 }
 0x5ad   :  { %6609 = vmatpush3.bf16.msra.mxu1 %v7273_v20  ;;  %6240 = vmatprep.mubr.msk.f32.mxu1 %vm6996_vm1, %v6997_v4  ;;  %v7624_v48 = vand.u32 4294901760, %v4353_v44 }
 0x5ae   :  { %6610 = vmatprep.subr.bf16.mxu1 %v6995_v56 }
 0x5af   :  { %v7630_v51 = vsub.f32 %v4353_v44, %v7624_v48 }
 0x5b1   :  { %6612 = vmatpush3.bf16.msra.mxu1 %v7285_v60 }
 0x5b2   :  { %6613 = vmatprep.subr.bf16.mxu1 %v6995_v56 }
 0x5b4   :  { %6241 = vmatmul.mubr.f32.vlgmr.msra.gmra.mrb[10].mxu1 %v2909_v45  ;;  %v4310_v45 = vld [vmem:[#allocation2 + $0x10] sm:$0xff] }
 0x5b5   :  { %6615 = vmatpush3.bf16.msra.mxu1 %v7277_v46  ;;  %6251 = vmatprep.mubr.msk.f32.mxu1 %vm6996_vm1, %v6997_v4  ;;  %v4356_v22 = vsel %vm853_vm2, %v4310_v45, 0 }
 0x5b6   :  { %6616 = vmatprep.subr.bf16.mxu1 %v6995_v56  ;;  %v7632_v52 = vand.u32 4294901760, %v4356_v22 }
 0x5b8   :  { %v7638_v18 = vsub.f32 %v4356_v22, %v7632_v52 }
 0x5b9   :  { %6618 = vmatpush3.bf16.msra.mxu1 %v7290_v63 }
 0x5ba   :  { %6619 = vmatprep.subr.bf16.mxu1 %v6995_v56 }
 0x5bc   :  { %6252 = vmatmul.mubr.f32.vlgmr.msra.gmra.mrb[10].mxu1 %v2907_v2 }
 0x5bd   :  { %6621 = vmatpush3.bf16.msra.mxu1 %v7273_v20  ;;  %6262 = vmatprep.mubr.msk.f32.mxu1 %vm6996_vm1, %v6997_v4 }
 0x5be   :  { %6622 = vmatprep.subr.bf16.mxu1 %v6995_v56 }
 0x5c1   :  { %6624 = vmatpush3.bf16.msra.mxu1 %v7285_v60 }
 0x5c2   :  { %6661 = vmatprep.subr.bf16.mxu1 %v6995_v56 }
 0x5c4   :  { %6263 = vmatmul.mubr.f32.vlgmr.msra.gmra.mrb[10].mxu1 %v2907_v2  ;;  %v7618_v2 = vand.u32 4294901760, %v4350_v36 }
 0x5c5   :  { %6663 = vmatpush3.bf16.msra.mxu1 %v7273_v20  ;;  %6339 = vmatprep.mubr.msk.f32.mxu1 %vm6996_vm1, %v6997_v4 }
 0x5c6   :  { %6664 = vmatprep.subr.bf16.mxu1 %v6995_v56  ;;  %v7622_v47 = vsub.f32 %v4350_v36, %v7618_v2 }
 0x5c9   :  { %6666 = vmatpush3.bf16.msra.mxu1 %v7285_v60 }
 0x5ca   :  { %6667 = vmatprep.subr.bf16.mxu1 %v6995_v56 }
 0x697   :  { %v3319_v31 = vpop.f32.mrb[10].mxu1 }
 0x698   :  { %v3323_v10 = vadd.f32 %v7303_v7, %v3319_v31  ;;  %v6264_v33 = vpop.f32.mrb[11].mxu1  ;;  %v4373_v7 = vand.u32 4294901760, %v7532_v5 }
 0x69a   :  { %6956 = vtanh.f32 %v3323_v10  ;;  %v7579_v57 = vsub.f32 %v7532_v5, %v4373_v7  ;;  %v7669_v33 = vpack.c.bf16 %v4377_v43, %v4373_v7  ;;  %v4566_v5 = vand.u32 4294901760, %v7607_v0 }
 0x69c   :  { %v6713_v13 = vpack.c.bf16 %v7584_v58, %v7579_v57 }
 0x6a4   :  { %v6957_v34 = vpop.eup %6956 }
 0x6a5   :  { %3325 = vst.msk [vmem:[#allocation2 + $0x28] sm:$0xff] %vm853_vm2, %v6957_v34  ;;  %v3327_v35 = vsel %vm853_vm2, %v6957_v34, 0  ;;  %v7673_v34 = vpack.c.bf16 %v4385_v3, %v4381_v62 }
 0x6a6   :  { %v3398_v16 = vand.u32 4294901760, %v3327_v35 }
 0x6a8   :  { %v3399_v37 = vsub.f32 %v3327_v35, %v3398_v16  ;;  %v4542_v35 = vand.u32 4294901760, %v7589_v6 }
 0x6aa   :  { %v3400_v25 = vand.u32 4294901760, %v3399_v37 }
 0x6ac   :  { %v3401_v29 = vsub.f32 %v3399_v37, %v3400_v25  ;;  %v4313_v21 = vld [vmem:[#allocation2 + $0x28] sm:$0xff] }
 0x6ad   :  { %v4365_v27 = vsel %vm853_vm2, %v4313_v21, 0 }
 0x6ae   :  { %v3402_v42 = vand.u32 4294901760, %v3401_v29  ;;  %v7656_v31 = vand.u32 4294901760, %v4365_v27  ;;  %v4567_v29 = vsub.f32 %v7607_v0, %v4566_v5 }
 0x6b0   :  { %6274 = vmatmul.mubr.f32.vlgmr.msra.gmra.mrb[10].mxu0 %v3402_v42  ;;  %v7661_v10 = vsub.f32 %v4365_v27, %v7656_v31  ;;  %v4579_v42 = vsub.f32 %v7609_v26, %v4578_v50  ;;  %v4568_v62 = vand.u32 4294901760, %v4567_v29 }
 0x6b1   :  { %6633 = vmatpush3.bf16.msra.mxu0 %v7283_v59  ;;  %6284 = vmatprep.mubr.msk.f32.mxu0 %vm6996_vm1, %v6997_v4 }
 0x6b2   :  { %6634 = vmatprep.subr.bf16.mxu0 %v6995_v56  ;;  %v4580_v3 = vand.u32 4294901760, %v4579_v42 }
 0x6b5   :  { %6636 = vmatpush3.bf16.msra.mxu0 %v7301_v8 }
 0x6b6   :  { %6637 = vmatprep.subr.bf16.mxu0 %v6995_v56 }
 0x6b8   :  { %6285 = vmatmul.mubr.f32.vlgmr.msra.gmra.mrb[10].mxu0 %v3398_v16 }
 0x6b9   :  { %6639 = vmatpush3.bf16.msra.mxu0 %v7275_v38  ;;  %6295 = vmatprep.mubr.msk.f32.mxu0 %vm6996_vm1, %v6997_v4 }
 0x6ba   :  { %6640 = vmatprep.subr.bf16.mxu0 %v6995_v56 }
 0x6bd   :  { %6642 = vmatpush3.bf16.msra.mxu0 %v7287_v61 }
 0x6be   :  { %6643 = vmatprep.subr.bf16.mxu0 %v6995_v56 }
 0x6c0   :  { %6296 = vmatmul.mubr.f32.vlgmr.msra.gmra.mrb[10].mxu0 %v3399_v37  ;;  %v4543_v37 = vsub.f32 %v7589_v6, %v4542_v35  ;;  %v6735_v6 = vpack.c.bf16 %v4578_v50, %v4566_v5 }
 0x6c1   :  { %6645 = vmatpush3.bf16.msra.mxu0 %v7273_v20  ;;  %6306 = vmatprep.mubr.msk.f32.mxu0 %vm6996_vm1, %v6997_v4 }
 0x6c2   :  { %6646 = vmatprep.subr.bf16.mxu0 %v6995_v56  ;;  %v4544_v7 = vand.u32 4294901760, %v4543_v37 }
 0x6c5   :  { %6648 = vmatpush3.bf16.msra.mxu0 %v7285_v60 }
 0x6c6   :  { %6649 = vmatprep.subr.bf16.mxu0 %v6995_v56 }
 0x6c8   :  { %6307 = vmatmul.mubr.f32.vlgmr.msra.gmra.mrb[10].mxu0 %v3400_v25 }
 0x6c9   :  { %6651 = vmatpush3.bf16.msra.mxu0 %v7277_v46  ;;  %6317 = vmatprep.mubr.msk.f32.mxu0 %vm6996_vm1, %v6997_v4 }
 0x6ca   :  { %6652 = vmatprep.subr.bf16.mxu0 %v6995_v56 }
 0x6cd   :  { %6654 = vmatpush3.bf16.msra.mxu0 %v7290_v63 }
 0x6ce   :  { %6655 = vmatprep.subr.bf16.mxu0 %v6995_v56 }
 0x6d0   :  { %6318 = vmatmul.mubr.f32.vlgmr.msra.gmra.mrb[10].mxu0 %v3398_v16 }
 0x6d1   :  { %6657 = vmatpush3.bf16.msra.mxu0 %v7273_v20  ;;  %6328 = vmatprep.mubr.msk.f32.mxu0 %vm6996_vm1, %v6997_v4 }
 0x6d2   :  { %6658 = vmatprep.subr.bf16.mxu0 %v6995_v56 }
 0x6d5   :  { %6660 = vmatpush3.bf16.msra.mxu0 %v7285_v60 }
 0x6d6   :  { %6714 = vmatprep.subr.bf16.mxu0 %v6713_v13  ;;  %v4536_v13 = vand.u32 4294901760, %v7579_v57 }
 0x6d8   :  { %6329 = vmatmul.mubr.f32.vlgmr.msra.gmra.mrb[10].mxu0 %v3398_v16  ;;  %v4554_v16 = vand.u32 4294901760, %v7591_v9  ;;  %v6729_v36 = vpack.c.bf16 %v4548_v14, %v4536_v13  ;;  %v4537_v40 = vsub.f32 %v7579_v57, %v4536_v13 }
 0x6d9   :  { %6716 = vmatpush1.bf16.msra.mxu0 %v6715_v17  ;;  %4775 = vmatprep.mubr.f32.mxu0 %v6997_v4 }
 0x6da   :  { %6718 = vmatprep.subr.bf16.mxu0 %v6717_v1  ;;  %v4555_v25 = vsub.f32 %v7591_v9, %v4554_v16  ;;  %v7697_v1 = vpack.c.bf16 %v4580_v3, %v4568_v62  ;;  %v4538_v44 = vand.u32 4294901760, %v4537_v40  ;;  %v4470_v3 = vand.u32 4294901760, %v7638_v18 }
 0x6db   :  { %v4481_v40 = vand.u32 4294901760, %v7646_v23 }
 0x6dc   :  { %v4556_v43 = vand.u32 4294901760, %v4555_v25 }
 0x6dd   :  { %6720 = vmatpush1.bf16.msra.mxu0 %v6719_v41  ;;  %v4549_v41 = vsub.f32 %v7584_v58, %v4548_v14 }
 0x6de   :  { %6722 = vmatprep.subr.bf16.mxu0 %v7669_v33  ;;  %v7695_v17 = vpack.c.bf16 %v4556_v43, %v4544_v7 }
 0x6df   :  { %v4550_v45 = vand.u32 4294901760, %v4549_v41 }
 0x6e0   :  { %4778 = vmatmul.mubr.f32.vlgmr.msra.gmra.mrb[12].mxu0 %v7622_v47 }
 0x6e1   :  { %4783 = vmatprep.mubr.f32.mxu0 %v6997_v4  ;;  %6724 = vmatpush1.bf16.msra.mxu0 %v7538_v55  ;;  %v7701_v22 = vpack.c.bf16 %v4550_v45, %v4538_v44  ;;  %v4482_v44 = vsub.f32 %v7646_v23, %v4481_v40  ;;  %v4492_v45 = vand.u32 4294901760, %v7654_v28 }
 0x6e2   :  { %6726 = vmatprep.subr.bf16.mxu0 %v7673_v34 }
 0x6e4   :  { %4786 = vmatmul.mubr.f32.gmra.mrb[14].mxu0 %v7630_v51 }
 0x6e5   :  { %4791 = vmatprep.mubr.f32.mxu0 %v6997_v4  ;;  %6728 = vmatpush1.bf16.msra.mxu0 %v7546_v30 }
 0x6e6   :  { %6730 = vmatprep.subr.bf16.mxu0 %v6729_v36  ;;  %v4471_v36 = vsub.f32 %v7638_v18, %v4470_v3 }
 0x6e8   :  { %4794 = vmatmul.mubr.f32.gmra.mrb[16].mxu0 %v7638_v18  ;;  %v4472_v41 = vand.u32 4294901760, %v4471_v36 }
 0x6e9   :  { %4799 = vmatprep.mubr.f32.mxu0 %v6997_v4 }
 0x6ec   :  { %4802 = vmatmul.mubr.f32.gmra.mrb[18].mxu0 %v7646_v23 }
 0x6ed   :  { %4807 = vmatprep.mubr.f32.mxu0 %v6997_v4 }
 0x6f0   :  { %4810 = vmatmul.mubr.f32.gmra.mrb[20].mxu0 %v7654_v28 }
 0x6f1   :  { %4815 = vmatprep.mubr.f32.mxu0 %v6997_v4 }
 0x6f4   :  { %4818 = vmatmul.mubr.f32.gmra.mrb[22].mxu0 %v7661_v10 }
 0x6f5   :  { %4823 = vmatprep.mubr.f32.mxu0 %v6997_v4 }
 0x7ab   :  { %v3810_v49 = vpop.f32.mrb[10].mxu0 }
 0x7ac   :  { %v3814_v53 = vadd.f32 %v7309_v39, %v3810_v49  ;;  %v6330_v54 = vpop.f32.mrb[11].mxu0  ;;  %v4503_v49 = vand.u32 4294901760, %v7661_v10 }
 0x7ae   :  { %6958 = vtanh.f32 %v3814_v53  ;;  %v4504_v54 = vsub.f32 %v7661_v10, %v4503_v49 }
 0x7b0   :  { %v4505_v23 = vand.u32 4294901760, %v4504_v54 }
 0x7b8   :  { %v6959_v19 = vpop.eup %6958 }
 0x7b9   :  { %3816 = vst.msk [vmem:[#allocation2 + $0x30] sm:$0xff] %vm853_vm2, %v6959_v19  ;;  %v3818_v21 = vsel %vm853_vm2, %v6959_v19, 0 }
 0x7ba   :  { %v3889_v27 = vand.u32 4294901760, %v3818_v21 }
 0x7bc   :  { %v3890_v37 = vsub.f32 %v3818_v21, %v3889_v27 }
 0x7be   :  { %v3891_v57 = vand.u32 4294901760, %v3890_v37 }
 0x7c0   :  { %v3892_v25 = vsub.f32 %v3890_v37, %v3891_v57  ;;  %v4314_v58 = vld [vmem:[#allocation2 + $0x30] sm:$0xff] }
 0x7c1   :  { %v4368_v29 = vsel %vm853_vm2, %v4314_v58, 0 }
 0x7c2   :  { %v3893_v42 = vand.u32 4294901760, %v3892_v25  ;;  %v7707_v7 = vand.u32 4294901760, %v4368_v29 }
 0x7c4   :  { %6340 = vmatmul.mubr.f32.vlgmr.msra.gmra.mrb[12].mxu1 %v3893_v42  ;;  %v7710_v39 = vsub.f32 %v4368_v29, %v7707_v7 }
 0x7c5   :  { %6669 = vmatpush3.bf16.msra.mxu1 %v7283_v59  ;;  %6350 = vmatprep.mubr.msk.f32.mxu1 %vm6996_vm1, %v6997_v4  ;;  %v4572_v59 = vand.u32 4294901760, %v7601_v12 }
 0x7c6   :  { %4826 = vmatmul.mubr.f32.gmra.mrb[24].mxu0 %v7710_v39  ;;  %6670 = vmatprep.subr.bf16.mxu1 %v6995_v56 }
 0x7c7   :  { %4831 = vmatprep.mubr.f32.mxu0 %v6997_v4 }
 0x7c9   :  { %6672 = vmatpush3.bf16.msra.mxu1 %v7301_v8 }
 0x7ca   :  { %6673 = vmatprep.subr.bf16.mxu1 %v6995_v56 }
 0x7cc   :  { %6351 = vmatmul.mubr.f32.vlgmr.msra.gmra.mrb[12].mxu1 %v3889_v27 }
 0x7cd   :  { %6675 = vmatpush3.bf16.msra.mxu1 %v7275_v38  ;;  %6361 = vmatprep.mubr.msk.f32.mxu1 %vm6996_vm1, %v6997_v4  ;;  %v4560_v38 = vand.u32 4294901760, %v7597_v11 }
 0x7ce   :  { %6676 = vmatprep.subr.bf16.mxu1 %v6995_v56 }
 0x7d1   :  { %6678 = vmatpush3.bf16.msra.mxu1 %v7287_v61  ;;  %v4561_v61 = vsub.f32 %v7597_v11, %v4560_v38 }
 0x7d2   :  { %6679 = vmatprep.subr.bf16.mxu1 %v6995_v56 }
 0x7d4   :  { %6362 = vmatmul.mubr.f32.vlgmr.msra.gmra.mrb[12].mxu1 %v3890_v37 }
 0x7d5   :  { %6681 = vmatpush3.bf16.msra.mxu1 %v7273_v20  ;;  %6372 = vmatprep.mubr.msk.f32.mxu1 %vm6996_vm1, %v6997_v4 }
 0x7d6   :  { %6682 = vmatprep.subr.bf16.mxu1 %v6995_v56 }
 0x7d9   :  { %6684 = vmatpush3.bf16.msra.mxu1 %v7285_v60 }
 0x7da   :  { %6685 = vmatprep.subr.bf16.mxu1 %v6995_v56 }
 0x7dc   :  { %6373 = vmatmul.mubr.f32.vlgmr.msra.gmra.mrb[12].mxu1 %v3891_v57 }
 0x7dd   :  { %6687 = vmatpush3.bf16.msra.mxu1 %v7277_v46  ;;  %6383 = vmatprep.mubr.msk.f32.mxu1 %vm6996_vm1, %v6997_v4  ;;  %v4448_v46 = vand.u32 4294901760, %v7622_v47 }
 0x7de   :  { %6688 = vmatprep.subr.bf16.mxu1 %v6995_v56 }
 0x7e1   :  { %6690 = vmatpush3.bf16.msra.mxu1 %v7290_v63  ;;  %v4562_v63 = vand.u32 4294901760, %v4561_v61  ;;  %v6733_v61 = vpack.c.bf16 %v4572_v59, %v4560_v38 }
 0x7e2   :  { %6691 = vmatprep.subr.bf16.mxu1 %v6995_v56 }
 0x7e4   :  { %6384 = vmatmul.mubr.f32.vlgmr.msra.gmra.mrb[12].mxu1 %v3889_v27 }
 0x7e5   :  { %6693 = vmatpush3.bf16.msra.mxu1 %v7273_v20  ;;  %6394 = vmatprep.mubr.msk.f32.mxu1 %vm6996_vm1, %v6997_v4  ;;  %v4573_v20 = vsub.f32 %v7601_v12, %v4572_v59 }
 0x7e6   :  { %6694 = vmatprep.subr.bf16.mxu1 %v6995_v56  ;;  %v4449_v56 = vsub.f32 %v7622_v47, %v4448_v46 }
 0x7e7   :  { %v4574_v8 = vand.u32 4294901760, %v4573_v20 }
 0x7e8   :  { %v4450_v43 = vand.u32 4294901760, %v4449_v56 }
 0x7e9   :  { %6696 = vmatpush3.bf16.msra.mxu1 %v7285_v60  ;;  %v4459_v60 = vand.u32 4294901760, %v7630_v51  ;;  %v6709_v13 = vpack.c.bf16 %v4574_v8, %v4562_v63 }
 0x7ea   :  { %6698 = vmatprep.subr.bf16.mxu1 %v7669_v33 }
 0x7eb   :  { %v4460_v62 = vsub.f32 %v7630_v51, %v4459_v60 }
 0x7ec   :  { %6395 = vmatmul.mubr.f32.vlgmr.msra.gmra.mrb[12].mxu1 %v3889_v27 }
 0x7ed   :  { %6700 = vmatpush1.bf16.msra.mxu1 %v7538_v55  ;;  %4445 = vmatprep.mubr.f32.mxu1 %v6997_v4  ;;  %v4461_v14 = vand.u32 4294901760, %v4460_v62 }
 0x7ee   :  { %6702 = vmatprep.subr.bf16.mxu1 %v7673_v34 }
 0x7f1   :  { %6704 = vmatpush1.bf16.msra.mxu1 %v7546_v30 }
 0x7f2   :  { %6706 = vmatprep.subr.bf16.mxu1 %v7701_v22  ;;  %v4493_v22 = vsub.f32 %v7654_v28, %v4492_v45 }
 0x7f4   :  { %4451 = vmatmul.mubr.f32.vlgmr.msra.gmra.mrb[14].mxu1 %v4450_v43  ;;  %v4494_v53 = vand.u32 4294901760, %v4493_v22 }
 0x7f5   :  { %4456 = vmatprep.mubr.f32.mxu1 %v6997_v4  ;;  %6708 = vmatpush1.bf16.msra.mxu1 %v7695_v17  ;;  %v4483_v17 = vand.u32 4294901760, %v4482_v44 }
 0x7f6   :  { %6710 = vmatprep.subr.bf16.mxu1 %v6709_v13 }
 0x7f8   :  { %4462 = vmatmul.mubr.f32.gmra.mrb[16].mxu1 %v4461_v14 }
 0x7f9   :  { %4467 = vmatprep.mubr.f32.mxu1 %v6997_v4  ;;  %6712 = vmatpush1.bf16.msra.mxu1 %v7697_v1  ;;  %v4514_v1 = vand.u32 4294901760, %v7710_v39 }
 0x7fb   :  { %v4515_v19 = vsub.f32 %v7710_v39, %v4514_v1 }
 0x7fc   :  { %4473 = vmatmul.mubr.f32.gmra.mrb[18].mxu1 %v4472_v41 }
 0x7fd   :  { %4478 = vmatprep.mubr.f32.mxu1 %v6997_v4  ;;  %v4516_v28 = vand.u32 4294901760, %v4515_v19 }
 0x800   :  { %4484 = vmatmul.mubr.f32.gmra.mrb[20].mxu1 %v4483_v17 }
 0x801   :  { %4489 = vmatprep.mubr.f32.mxu1 %v6997_v4 }
 0x804   :  { %4495 = vmatmul.mubr.f32.gmra.mrb[22].mxu1 %v4494_v53 }
 0x805   :  { %4500 = vmatprep.mubr.f32.mxu1 %v6997_v4 }
 0x808   :  { %4506 = vmatmul.mubr.f32.gmra.mrb[24].mxu1 %v4505_v23 }
 0x809   :  { %4511 = vmatprep.mubr.f32.mxu1 %v6997_v4 }
 0x80c   :  { %4517 = vmatmul.mubr.f32.gmra.mrb[26].mxu1 %v4516_v28 }
 0x80d   :  { %4522 = vmatprep.mubr.f32.mxu1 %v6997_v4 }
 0x8bf   :  { %v4301_v21 = vpop.f32.mrb[12].mxu1 }
 0x8c0   :  { %v4305_v27 = vadd.f32 %v7307_v32, %v4301_v21  ;;  %v6396_v37 = vpop.f32.mrb[13].mxu1  ;;  %v6731_v32 = vpack.c.bf16 %v4554_v16, %v4542_v35 }
 0x8c2   :  { %6960 = vtanh.f32 %v4305_v27 }
 0x8cc   :  { %v6961_v10 = vpop.eup %6960 }
 0x8cd   :  { %4307 = vst.msk [vmem:[#allocation2 + $0x38] sm:$0xff] %vm853_vm2, %v6961_v10 }
 0x8d4   :  { %v4315_v57 = vld [vmem:[#allocation2 + $0x38] sm:$0xff] }
 0x8d5   :  { %v4371_v25 = vsel %vm853_vm2, %v4315_v57, 0 }
 0x8d6   :  { %v7789_v58 = vand.u32 4294901760, %v4371_v25 }
 0x8d8   :  { %v4524_v29 = vsub.f32 %v4371_v25, %v7789_v58 }
 0x8da   :  { %4834 = vmatmul.mubr.f32.gmra.mrb[26].mxu0 %v4524_v29  ;;  %v4525_v42 = vand.u32 4294901760, %v4524_v29 }
 0x8db   :  { %4912 = vmatprep.mubr.f32.mxu0 %v6997_v4 }
 0x8dc   :  { %v4526_v39 = vsub.f32 %v4524_v29, %v4525_v42 }
 0x8de   :  { %4916 = vmatmul.mubr.f32.vlgmr.msra.gmra.mrb[12].mxu0 %v4448_v46  ;;  %v4527_v20 = vand.u32 4294901760, %v4526_v39 }
 0x8df   :  { %6732 = vmatpush1.bf16.msra.mxu0 %v6731_v32  ;;  %4921 = vmatprep.mubr.f32.mxu0 %v6997_v4 }
 0x8e0   :  { %6734 = vmatprep.subr.bf16.mxu0 %v6733_v61  ;;  %4528 = vmatmul.mubr.f32.gmra.mrb[28].mxu1 %v4527_v20 }
 0x8e1   :  { %4638 = vmatprep.mubr.f32.mxu1 %v6997_v4 }
 0x8e2   :  { %4925 = vmatmul.mubr.f32.gmra.mrb[14].mxu0 %v4459_v60 }
 0x8e3   :  { %6736 = vmatpush1.bf16.msra.mxu0 %v6735_v6  ;;  %4930 = vmatprep.mubr.f32.mxu0 %v6997_v4 }
 0x8e4   :  { %6738 = vmatprep.subr.bf16.mxu0 %v7669_v33  ;;  %4640 = vmatmul.mubr.f32.vlgmr.msra.gmra.mrb[14].mxu1 %v7618_v2 }
 0x8e5   :  { %4645 = vmatprep.mubr.f32.mxu1 %v6997_v4 }
 0x8e6   :  { %4934 = vmatmul.mubr.f32.gmra.mrb[16].mxu0 %v4470_v3 }
 0x8e7   :  { %4939 = vmatprep.mubr.f32.mxu0 %v6997_v4 }
 0x8e8   :  { %4647 = vmatmul.mubr.f32.gmra.mrb[16].mxu1 %v7624_v48 }
 0x8e9   :  { %4652 = vmatprep.mubr.f32.mxu1 %v6997_v4 }
 0x8ea   :  { %4943 = vmatmul.mubr.f32.gmra.mrb[18].mxu0 %v4481_v40 }
 0x8eb   :  { %4948 = vmatprep.mubr.f32.mxu0 %v6997_v4 }
 0x8ec   :  { %4654 = vmatmul.mubr.f32.gmra.mrb[18].mxu1 %v7632_v52 }
 0x8ed   :  { %4659 = vmatprep.mubr.f32.mxu1 %v6997_v4 }
 0x8ee   :  { %4952 = vmatmul.mubr.f32.gmra.mrb[20].mxu0 %v4492_v45 }
 0x8ef   :  { %4957 = vmatprep.mubr.f32.mxu0 %v6997_v4 }
 0x8f0   :  { %4661 = vmatmul.mubr.f32.gmra.mrb[20].mxu1 %v7640_v15 }
 0x8f1   :  { %4666 = vmatprep.mubr.f32.mxu1 %v6997_v4 }
 0x8f2   :  { %4961 = vmatmul.mubr.f32.gmra.mrb[22].mxu0 %v4503_v49 }
 0x8f3   :  { %4966 = vmatprep.mubr.f32.mxu0 %v6997_v4 }
 0x8f4   :  { %4668 = vmatmul.mubr.f32.gmra.mrb[22].mxu1 %v7648_v24 }
 0x8f5   :  { %4673 = vmatprep.mubr.f32.mxu1 %v6997_v4 }
 0x8f6   :  { %4970 = vmatmul.mubr.f32.gmra.mrb[24].mxu0 %v4514_v1 }
 0x8f7   :  { %4975 = vmatprep.mubr.f32.mxu0 %v6997_v4 }
 0x8f8   :  { %4675 = vmatmul.mubr.f32.gmra.mrb[24].mxu1 %v7656_v31 }
 0x8f9   :  { %4680 = vmatprep.mubr.f32.mxu1 %v6997_v4 }
 0x8fa   :  { %4979 = vmatmul.mubr.f32.gmra.mrb[26].mxu0 %v4525_v42 }
 0x8fb   :  { %5073 = vmatprep.mubr.f32.mxu0 %v6997_v4 }
 0x8fc   :  { %4682 = vmatmul.mubr.f32.gmra.mrb[26].mxu1 %v7707_v7 }
 0x8fd   :  { %4687 = vmatprep.mubr.f32.mxu1 %v6997_v4 }
 0x8fe   :  { %5075 = vmatmul.mubr.f32.vlgmr.msra.gmra.mrb[12].mxu0 %v7618_v2 }
 0x8ff   :  { %6740 = vmatpush1.bf16.msra.mxu0 %v7538_v55  ;;  %5080 = vmatprep.mubr.f32.mxu0 %v6997_v4 }
 0x900   :  { %6742 = vmatprep.subr.bf16.mxu0 %v7673_v34  ;;  %4689 = vmatmul.mubr.f32.gmra.mrb[28].mxu1 %v7789_v58 }
 0x902   :  { %5082 = vmatmul.mubr.f32.gmra.mrb[14].mxu0 %v7624_v48 }
 0x903   :  { %6744 = vmatpush1.bf16.msra.mxu0 %v7546_v30  ;;  %5087 = vmatprep.mubr.f32.mxu0 %v6997_v4 }
 0x906   :  { %5089 = vmatmul.mubr.f32.gmra.mrb[16].mxu0 %v7632_v52 }
 0x907   :  { %5094 = vmatprep.mubr.f32.mxu0 %v6997_v4 }
 0x90a   :  { %5096 = vmatmul.mubr.f32.gmra.mrb[18].mxu0 %v7640_v15 }
 0x90b   :  { %5101 = vmatprep.mubr.f32.mxu0 %v6997_v4 }
 0x90e   :  { %5103 = vmatmul.mubr.f32.gmra.mrb[20].mxu0 %v7648_v24 }
 0x90f   :  { %5108 = vmatprep.mubr.f32.mxu0 %v6997_v4 }
 0x912   :  { %5110 = vmatmul.mubr.f32.gmra.mrb[22].mxu0 %v7656_v31 }
 0x913   :  { %5115 = vmatprep.mubr.f32.mxu0 %v6997_v4 }
 0x916   :  { %5117 = vmatmul.mubr.f32.gmra.mrb[24].mxu0 %v7707_v7 }
 0x917   :  { %5122 = vmatprep.mubr.f32.mxu0 %v6997_v4 }
 0x91a   :  { %5124 = vmatmul.mubr.f32.gmra.mrb[26].mxu0 %v7789_v58 }
 0x91b   :  { %5202 = vmatprep.mubr.f32.mxu0 %v6997_v4 }
 0x91e   :  { %5204 = vmatmul.mubr.f32.vlgmr.msra.gmra.mrb[12].mxu0 %v7618_v2 }
 0x91f   :  { %5209 = vmatprep.mubr.f32.mxu0 %v6997_v4 }
 0x922   :  { %5211 = vmatmul.mubr.f32.gmra.mrb[14].mxu0 %v7624_v48 }
 0x923   :  { %5216 = vmatprep.mubr.f32.mxu0 %v6997_v4 }
 0x926   :  { %5218 = vmatmul.mubr.f32.gmra.mrb[16].mxu0 %v7632_v52 }
 0x927   :  { %5223 = vmatprep.mubr.f32.mxu0 %v6997_v4 }
 0x92a   :  { %5225 = vmatmul.mubr.f32.gmra.mrb[18].mxu0 %v7640_v15 }
 0x92b   :  { %5230 = vmatprep.mubr.f32.mxu0 %v6997_v4 }
 0x92e   :  { %5232 = vmatmul.mubr.f32.gmra.mrb[20].mxu0 %v7648_v24 }
 0x92f   :  { %5237 = vmatprep.mubr.f32.mxu0 %v6997_v4 }
 0x932   :  { %5239 = vmatmul.mubr.f32.gmra.mrb[22].mxu0 %v7656_v31  ;;  %v5267_v31 = vlaneseq }
 0x933   :  { %5244 = vmatprep.mubr.f32.mxu0 %v6997_v4 }
 0x934   :  { %v7880_v5 = vshrl.u32 %v5267_v31, 7 }
 0x936   :  { %5246 = vmatmul.mubr.f32.gmra.mrb[24].mxu0 %v7707_v7  ;;  %vm5269_vm4 = vcmp.lt.s32.totalorder %v7880_v5, 1  ;;  %vm5326_vm5 = vcmp.lt.s32.totalorder %v7880_v5, 7 }
 0x937   :  { %5251 = vmatprep.mubr.f32.mxu0 %v6997_v4 }
 0x93a   :  { %5253 = vmatmul.mubr.f32.gmra.mrb[26].mxu0 %v7789_v58 }
 0x9b7   :  { %v4641_v55 = vpop.f32.mrb[14].mxu1 }
 0x9b8   :  { %v4643_v30 = vpop.f32.mrb[15].mxu1 }
 0x9bb   :  { %v4648_v9 = vpop.f32.mrb[16].mxu1 }
 0x9bc   :  { %v4650_v11 = vpop.f32.mrb[17].mxu1 }
 0x9bf   :  { %v4655_v12 = vpop.f32.mrb[18].mxu1 }
 0x9c0   :  { %v4657_v0 = vpop.f32.mrb[19].mxu1 }
 0x9c3   :  { %v4662_v26 = vpop.f32.mrb[20].mxu1 }
 0x9c4   :  { %v4664_v2 = vpop.f32.mrb[21].mxu1 }
 0x9c7   :  { %v4669_v47 = vpop.f32.mrb[22].mxu1 }
 0x9c8   :  { %v4671_v48 = vpop.f32.mrb[23].mxu1 }
 0x9cb   :  { %v4676_v51 = vpop.f32.mrb[24].mxu1 }
 0x9cc   :  { %v4678_v52 = vpop.f32.mrb[25].mxu1 }
 0x9cf   :  { %v4683_v18 = vpop.f32.mrb[26].mxu1 }
 0x9d0   :  { %v7870_v15 = vpop.f32.mrb[27].mxu1 }
 0x9d3   :  { %v7872_v24 = vpop.f32.mrb[28].mxu1 }
 0x9d4   :  { %v7874_v4 = vpop.f32.mrb[29].mxu1 }
 0x9f1   :  { %v5205_v33 = vpop.f32.mrb[12].mxu0 }
 0x9f2   :  { %v7876_v34 = vadd.f32 %v5205_v33, %v4641_v55  ;;  %v5207_v35 = vpop.f32.mrb[13].mxu0 }
 0x9f3   :  { %v7878_v16 = vadd.f32 %v5207_v35, %v4643_v30 }
 0x9f4   :  { %v5259_v46 = vrot.slane %v7876_v34, 7 }
 0x9f5   :  { %v5212_v50 = vpop.f32.mrb[14].mxu0  ;;  %v5318_v60 = vrot.slane %v7878_v16, 1 }
 0x9f6   :  { %v7882_v7 = vadd.f32 %v5212_v50, %v4648_v9  ;;  %v5214_v38 = vpop.f32.mrb[15].mxu0 }
 0x9f7   :  { %v6758_v59 = vadd.f32 %v5214_v38, %v4650_v11 }
 0x9f8   :  { %v5260_v56 = vrot.slane %v7882_v7, 7 }
 0x9f9   :  { %v5319_v63 = vrot.slane %v6758_v59, 1  ;;  %v5219_v8 = vpop.f32.mrb[16].mxu0 }
 0x9fa   :  { %v7889_v43 = vadd.f32 %v5219_v8, %v4655_v12  ;;  %v5221_v62 = vpop.f32.mrb[17].mxu0  ;;  %v5276_v3 = vsel %vm5269_vm4, %v5259_v46, %v5260_v56 }
 0x9fb   :  { %v6760_v13 = vadd.f32 %v5221_v62, %v4657_v0  ;;  %5288 = vrot.lane.b32.xlu1 %v5276_v3, %s6998_s9  ;;  %v5333_v14 = vsel %vm5326_vm5, %v5318_v60, %v5319_v63 }
 0x9fc   :  { %v5261_v36 = vrot.slane %v7889_v43, 7  ;;  %5343 = vrot.lane.b32.xlu0 %v5333_v14, %s6998_s9 }
 0x9fd   :  { %v5320_v40 = vrot.slane %v6760_v13, 1  ;;  %v5226_v41 = vpop.f32.mrb[18].mxu0 }
 0x9fe   :  { %v7902_v44 = vadd.f32 %v5226_v41, %v4662_v26  ;;  %v5228_v45 = vpop.f32.mrb[19].mxu0  ;;  %v5275_v17 = vsel %vm5269_vm4, %v5260_v56, %v5261_v36 }
 0x9ff   :  { %v6762_v22 = vadd.f32 %v5228_v45, %v4664_v2  ;;  %v5332_v49 = vsel %vm5326_vm5, %v5319_v63, %v5320_v40 }
 0xa00   :  { %v5262_v53 = vrot.slane %v7902_v44, 7  ;;  %5290 = vrot.lane.b32.xlu0 %v5275_v17, %s6998_s9  ;;  %5345 = vrot.lane.b32.xlu1 %v5332_v49, %s6998_s9 }
 0xa01   :  { %v5321_v54 = vrot.slane %v6762_v22, 1  ;;  %v5233_v1 = vpop.f32.mrb[20].mxu0 }
 0xa02   :  { %v7911_v23 = vadd.f32 %v5233_v1, %v4669_v47  ;;  %v5235_v19 = vpop.f32.mrb[21].mxu0  ;;  %v5274_v28 = vsel %vm5269_vm4, %v5261_v36, %v5262_v53 }
 0xa03   :  { %v6764_v21 = vadd.f32 %v5235_v19, %v4671_v48  ;;  %v5331_v27 = vsel %vm5326_vm5, %v5320_v40, %v5321_v54 }
 0xa04   :  { %v5263_v37 = vrot.slane %v7911_v23, 7  ;;  %5292 = vrot.lane.b32.xlu1 %v5274_v28, %s6998_s9  ;;  %5347 = vrot.lane.b32.xlu0 %v5331_v27, %s6998_s9 }
 0xa05   :  { %v5322_v10 = vrot.slane %v6764_v21, 1  ;;  %v5240_v57 = vpop.f32.mrb[22].mxu0 }
 0xa06   :  { %v6765_v25 = vadd.f32 %v5240_v57, %v4676_v51  ;;  %v5242_v58 = vpop.f32.mrb[23].mxu0  ;;  %v5273_v29 = vsel %vm5269_vm4, %v5262_v53, %v5263_v37 }
 0xa07   :  { %v6766_v42 = vadd.f32 %v5242_v58, %v4678_v52  ;;  %v5330_v39 = vsel %vm5326_vm5, %v5321_v54, %v5322_v10 }
 0xa08   :  { %v5264_v32 = vrot.slane %v6765_v25, 7  ;;  %5294 = vrot.lane.b32.xlu0 %v5273_v29, %s6998_s9  ;;  %5349 = vrot.lane.b32.xlu1 %v5330_v39, %s6998_s9 }
 0xa09   :  { %v5323_v61 = vrot.slane %v6766_v42, 1  ;;  %v5247_v20 = vpop.f32.mrb[24].mxu0 }
 0xa0a   :  { %v7926_v6 = vadd.f32 %v5247_v20, %v4683_v18  ;;  %v5249_v55 = vpop.f32.mrb[25].mxu0  ;;  %v5272_v30 = vsel %vm5269_vm4, %v5263_v37, %v5264_v32 }
 0xa0b   :  { %v6768_v9 = vadd.f32 %v5249_v55, %v7870_v15  ;;  %v5329_v11 = vsel %vm5326_vm5, %v5322_v10, %v5323_v61 }
 0xa0c   :  { %v5265_v12 = vrot.slane %v7926_v6, 7  ;;  %5296 = vrot.lane.b32.xlu1 %v5272_v30, %s6998_s9  ;;  %5351 = vrot.lane.b32.xlu0 %v5329_v11, %s6998_s9 }
 0xa0d   :  { %v5324_v0 = vrot.slane %v6768_v9, 1  ;;  %v5254_v26 = vpop.f32.mrb[26].mxu0 }
 0xa0e   :  { %v6769_v2 = vadd.f32 %v5254_v26, %v7872_v24  ;;  %v5256_v47 = vpop.f32.mrb[27].mxu0  ;;  %v5271_v48 = vsel %vm5269_vm4, %v5264_v32, %v5265_v12 }
 0xa0f   :  { %v6770_v51 = vadd.f32 %v5256_v47, %v7874_v4  ;;  %v5328_v52 = vsel %vm5326_vm5, %v5323_v61, %v5324_v0 }
 0xa10   :  { %v5266_v18 = vrot.slane %v6769_v2, 7  ;;  %5298 = vrot.lane.b32.xlu0 %v5271_v48, %s6998_s9  ;;  %5353 = vrot.lane.b32.xlu1 %v5328_v52, %s6998_s9 }
 0xa11   :  { %v5325_v15 = vrot.slane %v6770_v51, 1 }
 0xa12   :  { %v5277_v24 = vsel %vm5269_vm4, %v5266_v18, %v5259_v46  ;;  %v5270_v31 = vsel %vm5269_vm4, %v5265_v12, %v5266_v18 }
 0xa13   :  { %v5334_v4 = vsel %vm5326_vm5, %v5325_v15, %v5318_v60  ;;  %v5327_v33 = vsel %vm5326_vm5, %v5324_v0, %v5325_v15 }
 0xa14   :  { %5286 = vrot.lane.b32.xlu0 %v5277_v24, %s6998_s9  ;;  %5300 = vrot.lane.b32.xlu1 %v5270_v31, %s6998_s9 }
 0xa18   :  { %5357 = vrot.lane.b32.xlu1 %v5334_v4, %s6998_s9  ;;  %5355 = vrot.lane.b32.xlu0 %v5327_v33, %s6998_s9 }
 0xa6d   :  { %v5289_v35 = vpop.permute.xlu1 %5288 }
 0xa6e   :  { %v5344_v50 = vpop.permute.xlu0 %5343  ;;  %v5311_v38 = vadd.f32 %v7882_v7, %v5289_v35 }
 0xa72   :  { %v5291_v59 = vpop.permute.xlu0 %5290  ;;  %v5346_v16 = vpop.permute.xlu1 %5345 }
 0xa73   :  { %v7961_v46 = vadd.f32 %v5346_v16, %v5311_v38  ;;  %v5312_v56 = vadd.f32 %v7889_v43, %v5291_v59 }
 0xa75   :  { %v5508_v5 = vmul.f32 -1.442695, %v7961_v46 }
 0xa76   :  { %v5293_v60 = vpop.permute.xlu1 %5292  ;;  %v5348_v63 = vpop.permute.xlu0 %5347 }
 0xa77   :  { %6962 = vpow2.f32 %v5508_v5  ;;  %v7965_v8 = vadd.f32 %v5348_v63, %v5312_v56  ;;  %v5313_v62 = vadd.f32 %v7902_v44, %v5293_v60 }
 0xa79   :  { %v5509_v3 = vmul.f32 -1.442695, %v7965_v8 }
 0xa7a   :  { %v5295_v13 = vpop.permute.xlu0 %5294  ;;  %v5350_v14 = vpop.permute.xlu1 %5349 }
 0xa7b   :  { %6964 = vpow2.f32 %v5509_v3  ;;  %v7969_v7 = vadd.f32 %v5350_v14, %v5313_v62  ;;  %v5314_v36 = vadd.f32 %v7911_v23, %v5295_v13 }
 0xa7d   :  { %v5510_v43 = vmul.f32 -1.442695, %v7969_v7 }
 0xa7e   :  { %v5297_v40 = vpop.permute.xlu1 %5296  ;;  %v5352_v41 = vpop.permute.xlu0 %5351 }
 0xa7f   :  { %6966 = vpow2.f32 %v5510_v43  ;;  %v7973_v45 = vadd.f32 %v5352_v41, %v5314_v36  ;;  %v5315_v22 = vadd.f32 %v6765_v25, %v5297_v40 }
 0xa81   :  { %v6963_v17 = vpop.eup %6962  ;;  %v5511_v44 = vmul.f32 -1.442695, %v7973_v45 }
 0xa82   :  { %v5400_v49 = vadd.f32 1.0, %v6963_v17  ;;  %v5299_v53 = vpop.permute.xlu0 %5298  ;;  %v5354_v54 = vpop.permute.xlu1 %5353 }
 0xa83   :  { %6968 = vpow2.f32 %v5511_v44  ;;  %v7976_v1 = vadd.f32 %v5354_v54, %v5315_v22  ;;  %v5316_v57 = vadd.f32 %v7926_v6, %v5299_v53 }
 0xa84   :  { %6970 = vrcp.f32 %v5400_v49 }
 0xa85   :  { %v6965_v19 = vpop.eup %6964  ;;  %v5512_v23 = vmul.f32 -1.442695, %v7976_v1 }
 0xa86   :  { %v5401_v28 = vadd.f32 1.0, %v6965_v19  ;;  %v5287_v21 = vpop.permute.xlu0 %5286  ;;  %v5301_v27 = vpop.permute.xlu1 %5300 }
 0xa87   :  { %6972 = vpow2.f32 %v5512_v23  ;;  %v5310_v37 = vadd.f32 %v7876_v34, %v5287_v21  ;;  %v5317_v58 = vadd.f32 %v6769_v2, %v5301_v27 }
 0xa88   :  { %6974 = vrcp.f32 %v5401_v28 }
 0xa89   :  { %v6967_v10 = vpop.eup %6966  ;;  %v5367_v25 = vadd.f32 %v5344_v50, %v5310_v37 }
 0xa8a   :  { %v5402_v29 = vadd.f32 1.0, %v6967_v10  ;;  %v5358_v42 = vpop.permute.xlu1 %5357  ;;  %v5356_v39 = vpop.permute.xlu0 %5355 }
 0xa8b   :  { %v5507_v32 = vmul.f32 -1.442695, %v5367_v25  ;;  %v5374_v61 = vadd.f32 %v5358_v42, %v5317_v58  ;;  %v5373_v20 = vadd.f32 %v5356_v39, %v5316_v57 }
 0xa8c   :  { %6976 = vrcp.f32 %v5402_v29 }
 0xa8d   :  { %v6969_v55 = vpop.eup %6968  ;;  %6978 = vpow2.f32 %v5507_v32  ;;  %v5514_v30 = vmul.f32 -1.442695, %v5374_v61  ;;  %v5513_v9 = vmul.f32 -1.442695, %v5373_v20 }
 0xa8e   :  { %v6971_v11 = vpop.eup %6970  ;;  %v5403_v12 = vadd.f32 1.0, %v6969_v55 }
 0xa8f   :  { %6980 = vpow2.f32 %v5514_v30  ;;  %5433 = vrot.lane.b32.xlu1 %v6971_v11, %s6994_s21 }
 0xa90   :  { %6982 = vrcp.f32 %v5403_v12 }
 0xa91   :  { %v6973_v34 = vpop.eup %6972  ;;  %6984 = vpow2.f32 %v5513_v9 }
 0xa92   :  { %v6975_v6 = vpop.eup %6974  ;;  %v5404_v0 = vadd.f32 1.0, %v6973_v34 }
 0xa93   :  { %5435 = vrot.lane.b32.xlu0 %v6975_v6, %s6994_s21 }
 0xa94   :  { %6986 = vrcp.f32 %v5404_v0 }
 0xa96   :  { %v6977_v26 = vpop.eup %6976 }
 0xa97   :  { %v6979_v2 = vpop.eup %6978  ;;  %5437 = vrot.lane.b32.xlu1 %v6977_v26, %s6994_s21 }
 0xa98   :  { %v5399_v47 = vadd.f32 1.0, %v6979_v2 }
 0xa99   :  { %v6981_v48 = vpop.eup %6980 }
 0xa9a   :  { %v6983_v51 = vpop.eup %6982  ;;  %6988 = vrcp.f32 %v5399_v47  ;;  %v5406_v52 = vadd.f32 1.0, %v6981_v48 }
 0xa9b   :  { %v6985_v18 = vpop.eup %6984  ;;  %5439 = vrot.lane.b32.xlu0 %v6983_v51, %s6994_s21 }
 0xa9c   :  { %6990 = vrcp.f32 %v5406_v52  ;;  %v5405_v15 = vadd.f32 1.0, %v6985_v18 }
 0xa9e   :  { %v6987_v24 = vpop.eup %6986  ;;  %6992 = vrcp.f32 %v5405_v15 }
 0xa9f   :  { %5441 = vrot.lane.b32.xlu1 %v6987_v24, %s6994_s21 }
 0xaa4   :  { %v6989_v31 = vpop.eup %6988 }
 0xaa5   :  { %5431 = vrot.lane.b32.xlu0 %v6989_v31, %s6994_s21 }
 0xaa6   :  { %v6991_v4 = vpop.eup %6990 }
 0xaa7   :  { %5445 = vrot.lane.b32.xlu1 %v6991_v4, %s6994_s21 }
 0xaa8   :  { %v6993_v33 = vpop.eup %6992 }
 0xaa9   :  { %5443 = vrot.lane.b32.xlu0 %v6993_v33, %s6994_s21 }
 0xb01   :  { %v5434_v35 = vpop.permute.xlu1 %5433 }
 0xb02   :  { %v5456_v50 = vmul.f32 %v5434_v35, %v7961_v46 }
 0xb04   :  { %5473 = vrot.lane.b32.xlu1 %v5456_v50, %s6998_s9 }
 0xb05   :  { %v5436_v38 = vpop.permute.xlu0 %5435 }
 0xb06   :  { %v5457_v59 = vmul.f32 %v5436_v38, %v7965_v8 }
 0xb08   :  { %5475 = vrot.lane.b32.xlu0 %v5457_v59, %s6998_s9 }
 0xb09   :  { %v5438_v16 = vpop.permute.xlu1 %5437 }
 0xb0a   :  { %v5458_v56 = vmul.f32 %v5438_v16, %v7969_v7 }
 0xb0c   :  { %5477 = vrot.lane.b32.xlu1 %v5458_v56, %s6998_s9 }
 0xb0d   :  { %v5440_v5 = vpop.permute.xlu0 %5439 }
 0xb0e   :  { %v5459_v60 = vmul.f32 %v5440_v5, %v7973_v45 }
 0xb10   :  { %5479 = vrot.lane.b32.xlu0 %v5459_v60, %s6998_s9 }
 0xb11   :  { %v5442_v63 = vpop.permute.xlu1 %5441 }
 0xb12   :  { %v5460_v46 = vmul.f32 %v5442_v63, %v7976_v1 }
 0xb14   :  { %5481 = vrot.lane.b32.xlu1 %v5460_v46, %s6998_s9 }
 0xb17   :  { %v5432_v62 = vpop.permute.xlu0 %5431 }
 0xb18   :  { %v5455_v3 = vmul.f32 %v5432_v62, %v5367_v25 }
 0xb19   :  { %v5446_v8 = vpop.permute.xlu1 %5445 }
 0xb1a   :  { %v5462_v13 = vmul.f32 %v5446_v8, %v5374_v61  ;;  %5471 = vrot.lane.b32.xlu0 %v5455_v3, %s6998_s9 }
 0xb1b   :  { %v5444_v14 = vpop.permute.xlu0 %5443 }
 0xb1c   :  { %v5461_v7 = vmul.f32 %v5444_v14, %v5373_v20  ;;  %5485 = vrot.lane.b32.xlu1 %v5462_v13, %s6998_s9 }
 0xb1e   :  { %5483 = vrot.lane.b32.xlu0 %v5461_v7, %s6998_s9 }
 0xb76   :  { %v5474_v36 = vpop.permute.xlu1 %5473 }
 0xb77   :  { %5496 = vst.msk [vmem:[%s8036_s2 + $0x8] sm:$0xff] %vm853_vm2, %v5474_v36 }
 0xb7a   :  { %v5476_v43 = vpop.permute.xlu0 %5475 }
 0xb7b   :  { %5497 = vst.msk [vmem:[%s8036_s2 + $0x10] sm:$0xff] %vm853_vm2, %v5476_v43 }
 0xb7e   :  { %v5478_v40 = vpop.permute.xlu1 %5477 }
 0xb7f   :  { %5498 = vst.msk [vmem:[%s8036_s2 + $0x18] sm:$0xff] %vm853_vm2, %v5478_v40 }
 0xb82   :  { %v5480_v41 = vpop.permute.xlu0 %5479 }
 0xb83   :  { %5499 = vst.msk [vmem:[%s8036_s2 + $0x20] sm:$0xff] %vm853_vm2, %v5480_v41 }
 0xb86   :  { %v5482_v45 = vpop.permute.xlu1 %5481 }
 0xb87   :  { %5500 = vst.msk [vmem:[%s8036_s2 + $0x28] sm:$0xff] %vm853_vm2, %v5482_v45 }
 0xb8c   :  { %v5472_v17 = vpop.permute.xlu0 %5471 }
 0xb8d   :  { %5495 = vst.msk [vmem:[%s8036_s2] sm:$0xff] %vm853_vm2, %v5472_v17 }
 0xb8e   :  { %v5486_v22 = vpop.permute.xlu1 %5485 }
 0xb8f   :  { %5502 = vst.msk [vmem:[%s8036_s2 + $0x38] sm:$0xff] %vm853_vm2, %v5486_v22 }
 0xb90   :  { %v5484_v44 = vpop.permute.xlu0 %5483 }
 0xb91   :  { %5501 = vst.msk [vmem:[%s8036_s2 + $0x30] sm:$0xff] %vm853_vm2, %v5484_v44 }

</bundles_post_ra>
